<compile_context>
chip_gen: v5e
topology: v5e:2x2
jax: 0.10.0
libtpu: 0.0.40
codegen_flags: <defaults>
</compile_context>

<pallas_src>
import functools

import jax
import jax.numpy as jnp
from jax import lax
from jax.experimental import pallas as pl
from jax.experimental.pallas import tpu as pltpu


def _round_up(x, m):
    return (x + m - 1) // m * m


def _luka_loss_kernel(pred_ref, sel_ref, loss_ref, corr_ref, *, seq_len, n_labels):
    L = n_labels
    B, tsL = pred_ref.shape                       # lanes = tokens * labels, interleaved

    p = pred_ref[...].astype(jnp.float32)         # (B, tsL); bf16 upcast happens here
    sel = sel_ref[...].astype(jnp.int32) > 0      # (B, tsL) one-hot of gold labels

    # ---- lane bookkeeping (block start is always a multiple of L) ----
    lane = lax.broadcasted_iota(jnp.int32, (1, tsL), 1)       # block-local lane index
    glane = pl.program_id(0) * tsL + lane                      # global lane index per row
    valid = glane < seq_len * L                                # real tokens (ragged tail off)
    interior = (glane >= L) & (glane < (seq_len - 1) * L)      # tokens 1 .. S-2

    # per-lane label index j % L, exactly in f32 (tsL << 2^23, +0.5 guards rounding)
    lane_f = lane.astype(jnp.float32)
    lbl = lane_f - L * jnp.floor((lane_f + 0.5) * (1.0 / L))   # (1, tsL), values 0..L-1

    # ---- loss path: sum of pred at the gold label over all real tokens ----
    gathered_sum = jnp.sum(jnp.where(sel & valid, p, 0.0))

    # ---- per-token max over its L interleaved lanes (masked log-step rolls) ----
    # Direction probe: True iff pltpu.roll(x, +d) pulls values from lower lane
    # indices (jnp.roll convention).  Makes the trees below convention-agnostic.
    probe = pltpu.roll(lbl, 1, axis=1)
    dir_lo = probe == jnp.where(lbl == 0.0, jnp.float32(L - 1), lbl - 1.0)

    neg_inf = jnp.float32(-jnp.inf)
    t1 = p      # prefix-max tree (within the token's group of L lanes)
    t2 = p      # suffix-max tree
    d = 1
    while d < L:                                   # d = 1, 2, 4, ... (static unroll)
        ge_d = lbl >= d                            # lane has an in-group neighbor d below
        le_d = lbl <= (L - 1 - d)                  # lane has an in-group neighbor d above
        m1 = (dir_lo & ge_d) | (~dir_lo & le_d)
        m2 = (dir_lo & le_d) | (~dir_lo & ge_d)
        t1 = jnp.maximum(t1, jnp.where(m1, pltpu.roll(t1, d, axis=1), neg_inf))
        t2 = jnp.maximum(t2, jnp.where(m2, pltpu.roll(t2, tsL - d, axis=1), neg_inf))
        d *= 2
    group_max = jnp.maximum(t1, t2)                # (B, tsL): max over the lane's token

    # gold lane attains its token's max  (ties over labels count as correct)
    correct = sel & interior & (p >= group_max)
    corr_sum = jnp.sum(jnp.where(correct, 1, 0))

    # ---- per-block partials, lane-0 of a (1, 128) tile ----
    lane0 = lax.broadcasted_iota(jnp.int32, (1, 128), 1) == 0
    loss_ref[...] = jnp.where(lane0, gathered_sum, 0.0)
    corr_ref[...] = jnp.where(lane0, corr_sum, 0)


def luka_loss(pred, gold, *, target_block_bytes=2 * 1024 * 1024):
    """pred: (B, S, L) float log-probs; gold: (B, S) int labels.

    Returns (loss, num_correct) matching LukaLoss.get_luka_loss and
    count_correct_labels(log_p[:, 1:S-1, :], gold[:, 1:S-1]).
    """
    B, S, L = pred.shape
    assert L >= 3, "expects num_label + 2 >= 3 labels"
    if not jnp.issubdtype(pred.dtype, jnp.floating):
        pred = pred.astype(jnp.float32)
    gold = gold.astype(jnp.int32)

    orig_S = S
    if S < 128:
        # Tiny sequences: pad once to a single 128-token tile (cheap).  Long
        # sequences are never padded; ragged tails are masked in-kernel.
        pred = jnp.pad(pred, ((0, 0), (0, 128 - S), (0, 0)))
        gold = jnp.pad(gold, ((0, 0), (0, 128 - S)))
        S = 128

    # Free, layout-preserving reshape: lane j of row b == pred[b, j // L, j % L].
    pred2 = pred.reshape(B, S * L)
    # One-hot of gold in the same interleaved layout (int8: +1 byte/elt of HBM,
    # replaces both the gather and any in-kernel gold expansion).
    sel = (gold[:, :, None] == jnp.arange(L, dtype=jnp.int32)[None, None, :])
    sel = sel.astype(jnp.int8).reshape(B, S * L)

    itemsize = pred.dtype.itemsize
    # Sequence tile: multiple of 128 tokens, ~MiB-scale pred blocks, never larger
    # than the sequence, and split >= 2 ways when possible (v7x two TensorCores).
    ts = max(128, (target_block_bytes // (B * L * itemsize)) // 128 * 128)
    ts = min(ts, (S // 128) * 128)
    if S > 128:
        ts = min(ts, max(128, _round_up(-(-S // 2), 128)))
    num_blocks = pl.cdiv(S, ts)
    tsL = ts * L

    # Double-buffered inputs + f32 temporaries + headroom; <= 40 MiB (v7x-safe).
    block_bytes = B * tsL * (itemsize + 1)
    vmem_limit = int(min(40 * 1024 * 1024,
                         max(16 * 1024 * 1024,
                             2 * block_bytes + 6 * B * tsL * 4 + (2 << 20))))

    loss_parts, corr_parts = pl.pallas_call(
        functools.partial(_luka_loss_kernel, seq_len=orig_S, n_labels=L),
        grid=(num_blocks,),
        in_specs=[
            pl.BlockSpec((B, tsL), lambda i: (0, i)),
            pl.BlockSpec((B, tsL), lambda i: (0, i)),
        ],
        out_specs=(
            pl.BlockSpec((1, 128), lambda i: (0, i)),
            pl.BlockSpec((1, 128), lambda i: (0, i)),
        ),
        out_shape=(
            jax.ShapeDtypeStruct((1, num_blocks * 128), jnp.float32),
            jax.ShapeDtypeStruct((1, num_blocks * 128), jnp.int32),
        ),
        compiler_params=pltpu.CompilerParams(
            dimension_semantics=("parallel",),
            vmem_limit_bytes=vmem_limit,
        ),
    )(pred2, sel)

    # Tiny final reduction + sign/const fold in the wrapper.
    loss = jnp.float32(B * orig_S - 1) - jnp.sum(loss_parts)
    num_correct = jnp.sum(corr_parts)
    return loss, num_correct


def _reference(pred, gold):
    B, S, L = pred.shape
    gathered = jnp.take_along_axis(pred, gold[:, :, None].astype(jnp.int32), axis=2)
    loss = -jnp.sum(gathered) + jnp.float32(B * S - 1)
    y_pred = jnp.argmax(pred[:, 1:S - 1, :], axis=-1).astype(jnp.int32)
    correct = jnp.sum((y_pred == gold[:, 1:S - 1]).astype(jnp.int32))
    return loss, correct


if __name__ == "__main__":
    key = jax.random.PRNGKey(0)
    num_label = 5
    L = num_label + 2          # opt.num_label + 2, as asserted in forward()

    # Small shape from the module spec, plus a multi-block ragged-tail shape to
    # exercise the no-pad masking and the "parallel" grid path.
    for (B, S) in ((2, 8), (2, 300)):
        k_pred, k_gold = jax.random.split(jax.random.fold_in(key, S))
        logits = jax.random.normal(k_pred, (B, S, L), dtype=jnp.float32)
        pred = jax.nn.log_softmax(logits, axis=-1)     # log_p, as the module expects
        gold = jax.random.randint(k_gold, (B, S), 0, L, dtype=jnp.int32)

        loss, num_correct = luka_loss(pred, gold)
        jax.block_until_ready((loss, num_correct))

        ref_loss, ref_correct = _reference(pred, gold)
        assert jnp.allclose(loss, ref_loss, rtol=1e-3, atol=1e-3), (loss, ref_loss)
        assert int(num_correct) == int(ref_correct), (num_correct, ref_correct)

    # TODO(synk): label-dict file I/O, get_label()/F1 bookkeeping and epoch
    # stats are host-side Python, intentionally not ported to the kernel.
    print("KERNEL_OK")
</pallas_src>

<mosaic_0001>
module attributes {stable_mosaic.version = 11 : i64} {
  func.func @_luka_loss_kernel(%arg0: i32, %arg1: memref<2x896xf32, #tpu.memory_space<vmem>>, %arg2: memref<2x896xi8, #tpu.memory_space<vmem>>, %arg3: memref<1x128xf32, #tpu.memory_space<vmem>>, %arg4: memref<1x128xi32, #tpu.memory_space<vmem>>) attributes {dimension_semantics = [#tpu.dimension_semantics<parallel>], iteration_bounds = array<i64: 1>, scalar_prefetch = 0 : i64, scratch_operands = 0 : i64, tpu.core_type = #tpu.core_type<tc>, window_params = [{transform_indices = @transform_0, window_bounds = array<i64: 2, 896>}, {transform_indices = @transform_1, window_bounds = array<i64: 2, 896>}, {transform_indices = @transform_2, window_bounds = array<i64: 1, 128>}, {transform_indices = @transform_3, window_bounds = array<i64: 1, 128>}]} {
    %c0 = arith.constant 0 : index
    %c0_0 = arith.constant 0 : index
    %0 = vector.load %arg1[%c0, %c0_0] : memref<2x896xf32, #tpu.memory_space<vmem>>, vector<2x896xf32>
    %c0_1 = arith.constant 0 : index
    %c0_2 = arith.constant 0 : index
    %1 = vector.load %arg2[%c0_1, %c0_2] : memref<2x896xi8, #tpu.memory_space<vmem>>, vector<2x896xi8>
    %2 = arith.extsi %1 : vector<2x896xi8> to vector<2x896xi32>
    %c0_i32 = arith.constant 0 : i32
    %3 = vector.broadcast %c0_i32 : i32 to vector<2x896xi32>
    %4 = arith.cmpi sgt, %2, %3 : vector<2x896xi32>
    %5 = tpu.iota {dimensions = array<i32: 1>} : vector<1x896xi32>
    %c896_i32 = arith.constant 896 : i32
    %6 = arith.muli %arg0, %c896_i32 : i32
    %7 = vector.broadcast %6 : i32 to vector<1x896xi32>
    %8 = arith.addi %7, %5 : vector<1x896xi32>
    %c56_i32 = arith.constant 56 : i32
    %9 = vector.broadcast %c56_i32 : i32 to vector<1x896xi32>
    %10 = arith.cmpi slt, %8, %9 : vector<1x896xi32>
    %c7_i32 = arith.constant 7 : i32
    %11 = vector.broadcast %c7_i32 : i32 to vector<1x896xi32>
    %12 = arith.cmpi sge, %8, %11 : vector<1x896xi32>
    %c49_i32 = arith.constant 49 : i32
    %13 = vector.broadcast %c49_i32 : i32 to vector<1x896xi32>
    %14 = arith.cmpi slt, %8, %13 : vector<1x896xi32>
    %15 = arith.andi %12, %14 : vector<1x896xi1>
    %16 = arith.sitofp %5 : vector<1x896xi32> to vector<1x896xf32>
    %cst = arith.constant 5.000000e-01 : f32
    %17 = vector.broadcast %cst : f32 to vector<1x896xf32>
    %18 = arith.addf %16, %17 : vector<1x896xf32>
    %cst_3 = arith.constant 0.142857149 : f32
    %19 = vector.broadcast %cst_3 : f32 to vector<1x896xf32>
    %20 = arith.mulf %18, %19 : vector<1x896xf32>
    %21 = math.floor %20 : vector<1x896xf32>
    %cst_4 = arith.constant 7.000000e+00 : f32
    %22 = vector.broadcast %cst_4 : f32 to vector<1x896xf32>
    %23 = arith.mulf %22, %21 : vector<1x896xf32>
    %24 = arith.subf %16, %23 : vector<1x896xf32>
    %25 = vector.broadcast %10 : vector<1x896xi1> to vector<2x896xi1>
    %26 = arith.andi %4, %25 : vector<2x896xi1>
    %cst_5 = arith.constant 0.000000e+00 : f32
    %27 = vector.broadcast %cst_5 : f32 to vector<2x896xf32>
    %28 = arith.select %26, %0, %27 : vector<2x896xi1>, vector<2x896xf32>
    %29 = vector.shape_cast %28 : vector<2x896xf32> to vector<1x2x896xf32>
    %cst_6 = arith.constant dense<0.000000e+00> : vector<1xf32>
    %30 = vector.multi_reduction <add>, %29, %cst_6 [1, 2] : vector<1x2x896xf32> to vector<1xf32>
    %31 = vector.shape_cast %30 : vector<1xf32> to vector<1x1x1xf32>
    %32 = vector.extract %31[0, 0, 0] : f32 from vector<1x1x1xf32>
    %c1_i32 = arith.constant 1 : i32
    %33 = tpu.dynamic_rotate %24 by %c1_i32 dim 1 : vector<1x896xf32>, i32 -> vector<1x896xf32>
    %cst_7 = arith.constant 0.000000e+00 : f32
    %34 = vector.broadcast %cst_7 : f32 to vector<1x896xf32>
    %35 = arith.cmpf oeq, %24, %34 : vector<1x896xf32>
    %cst_8 = arith.constant 1.000000e+00 : f32
    %36 = vector.broadcast %cst_8 : f32 to vector<1x896xf32>
    %37 = arith.subf %24, %36 : vector<1x896xf32>
    %cst_9 = arith.constant 6.000000e+00 : f32
    %38 = vector.broadcast %cst_9 : f32 to vector<1x896xf32>
    %39 = arith.select %35, %38, %37 : vector<1x896xi1>, vector<1x896xf32>
    %40 = arith.cmpf oeq, %33, %39 : vector<1x896xf32>
    %cst_10 = arith.constant 1.000000e+00 : f32
    %41 = vector.broadcast %cst_10 : f32 to vector<1x896xf32>
    %42 = arith.cmpf oge, %24, %41 : vector<1x896xf32>
    %cst_11 = arith.constant 5.000000e+00 : f32
    %43 = vector.broadcast %cst_11 : f32 to vector<1x896xf32>
    %44 = arith.cmpf ole, %24, %43 : vector<1x896xf32>
    %45 = arith.andi %40, %42 : vector<1x896xi1>
    %cst_12 = arith.constant dense<true> : vector<1x896xi1>
    %46 = arith.xori %40, %cst_12 : vector<1x896xi1>
    %47 = arith.andi %46, %44 : vector<1x896xi1>
    %48 = arith.ori %45, %47 : vector<1x896xi1>
    %49 = arith.andi %40, %44 : vector<1x896xi1>
    %cst_13 = arith.constant dense<true> : vector<1x896xi1>
    %50 = arith.xori %40, %cst_13 : vector<1x896xi1>
    %51 = arith.andi %50, %42 : vector<1x896xi1>
    %52 = arith.ori %49, %51 : vector<1x896xi1>
    %c1_i32_14 = arith.constant 1 : i32
    %53 = tpu.dynamic_rotate %0 by %c1_i32_14 dim 1 : vector<2x896xf32>, i32 -> vector<2x896xf32>
    %cst_15 = arith.constant 0xFF800000 : f32
    %54 = vector.shape_cast %48 : vector<1x896xi1> to vector<1x896xi1>
    %55 = vector.broadcast %54 : vector<1x896xi1> to vector<2x896xi1>
    %56 = vector.broadcast %cst_15 : f32 to vector<2x896xf32>
    %57 = arith.select %55, %53, %56 : vector<2x896xi1>, vector<2x896xf32>
    %58 = arith.maximumf %0, %57 : vector<2x896xf32>
    %c895_i32 = arith.constant 895 : i32
    %59 = tpu.dynamic_rotate %0 by %c895_i32 dim 1 : vector<2x896xf32>, i32 -> vector<2x896xf32>
    %cst_16 = arith.constant 0xFF800000 : f32
    %60 = vector.shape_cast %52 : vector<1x896xi1> to vector<1x896xi1>
    %61 = vector.broadcast %60 : vector<1x896xi1> to vector<2x896xi1>
    %62 = vector.broadcast %cst_16 : f32 to vector<2x896xf32>
    %63 = arith.select %61, %59, %62 : vector<2x896xi1>, vector<2x896xf32>
    %64 = arith.maximumf %0, %63 : vector<2x896xf32>
    %cst_17 = arith.constant 2.000000e+00 : f32
    %65 = vector.broadcast %cst_17 : f32 to vector<1x896xf32>
    %66 = arith.cmpf oge, %24, %65 : vector<1x896xf32>
    %cst_18 = arith.constant 4.000000e+00 : f32
    %67 = vector.broadcast %cst_18 : f32 to vector<1x896xf32>
    %68 = arith.cmpf ole, %24, %67 : vector<1x896xf32>
    %69 = arith.andi %40, %66 : vector<1x896xi1>
    %cst_19 = arith.constant dense<true> : vector<1x896xi1>
    %70 = arith.xori %40, %cst_19 : vector<1x896xi1>
    %71 = arith.andi %70, %68 : vector<1x896xi1>
    %72 = arith.ori %69, %71 : vector<1x896xi1>
    %73 = arith.andi %40, %68 : vector<1x896xi1>
    %cst_20 = arith.constant dense<true> : vector<1x896xi1>
    %74 = arith.xori %40, %cst_20 : vector<1x896xi1>
    %75 = arith.andi %74, %66 : vector<1x896xi1>
    %76 = arith.ori %73, %75 : vector<1x896xi1>
    %c2_i32 = arith.constant 2 : i32
    %77 = tpu.dynamic_rotate %58 by %c2_i32 dim 1 : vector<2x896xf32>, i32 -> vector<2x896xf32>
    %cst_21 = arith.constant 0xFF800000 : f32
    %78 = vector.shape_cast %72 : vector<1x896xi1> to vector<1x896xi1>
    %79 = vector.broadcast %78 : vector<1x896xi1> to vector<2x896xi1>
    %80 = vector.broadcast %cst_21 : f32 to vector<2x896xf32>
    %81 = arith.select %79, %77, %80 : vector<2x896xi1>, vector<2x896xf32>
    %82 = arith.maximumf %58, %81 : vector<2x896xf32>
    %c894_i32 = arith.constant 894 : i32
    %83 = tpu.dynamic_rotate %64 by %c894_i32 dim 1 : vector<2x896xf32>, i32 -> vector<2x896xf32>
    %cst_22 = arith.constant 0xFF800000 : f32
    %84 = vector.shape_cast %76 : vector<1x896xi1> to vector<1x896xi1>
    %85 = vector.broadcast %84 : vector<1x896xi1> to vector<2x896xi1>
    %86 = vector.broadcast %cst_22 : f32 to vector<2x896xf32>
    %87 = arith.select %85, %83, %86 : vector<2x896xi1>, vector<2x896xf32>
    %88 = arith.maximumf %64, %87 : vector<2x896xf32>
    %cst_23 = arith.constant 4.000000e+00 : f32
    %89 = vector.broadcast %cst_23 : f32 to vector<1x896xf32>
    %90 = arith.cmpf oge, %24, %89 : vector<1x896xf32>
    %cst_24 = arith.constant 2.000000e+00 : f32
    %91 = vector.broadcast %cst_24 : f32 to vector<1x896xf32>
    %92 = arith.cmpf ole, %24, %91 : vector<1x896xf32>
    %93 = arith.andi %40, %90 : vector<1x896xi1>
    %cst_25 = arith.constant dense<true> : vector<1x896xi1>
    %94 = arith.xori %40, %cst_25 : vector<1x896xi1>
    %95 = arith.andi %94, %92 : vector<1x896xi1>
    %96 = arith.ori %93, %95 : vector<1x896xi1>
    %97 = arith.andi %40, %92 : vector<1x896xi1>
    %cst_26 = arith.constant dense<true> : vector<1x896xi1>
    %98 = arith.xori %40, %cst_26 : vector<1x896xi1>
    %99 = arith.andi %98, %90 : vector<1x896xi1>
    %100 = arith.ori %97, %99 : vector<1x896xi1>
    %c4_i32 = arith.constant 4 : i32
    %101 = tpu.dynamic_rotate %82 by %c4_i32 dim 1 : vector<2x896xf32>, i32 -> vector<2x896xf32>
    %cst_27 = arith.constant 0xFF800000 : f32
    %102 = vector.shape_cast %96 : vector<1x896xi1> to vector<1x896xi1>
    %103 = vector.broadcast %102 : vector<1x896xi1> to vector<2x896xi1>
    %104 = vector.broadcast %cst_27 : f32 to vector<2x896xf32>
    %105 = arith.select %103, %101, %104 : vector<2x896xi1>, vector<2x896xf32>
    %106 = arith.maximumf %82, %105 : vector<2x896xf32>
    %c892_i32 = arith.constant 892 : i32
    %107 = tpu.dynamic_rotate %88 by %c892_i32 dim 1 : vector<2x896xf32>, i32 -> vector<2x896xf32>
    %cst_28 = arith.constant 0xFF800000 : f32
    %108 = vector.shape_cast %100 : vector<1x896xi1> to vector<1x896xi1>
    %109 = vector.broadcast %108 : vector<1x896xi1> to vector<2x896xi1>
    %110 = vector.broadcast %cst_28 : f32 to vector<2x896xf32>
    %111 = arith.select %109, %107, %110 : vector<2x896xi1>, vector<2x896xf32>
    %112 = arith.maximumf %88, %111 : vector<2x896xf32>
    %113 = arith.maximumf %106, %112 : vector<2x896xf32>
    %114 = vector.broadcast %15 : vector<1x896xi1> to vector<2x896xi1>
    %115 = arith.andi %4, %114 : vector<2x896xi1>
    %116 = arith.cmpf oge, %0, %113 : vector<2x896xf32>
    %117 = arith.andi %115, %116 : vector<2x896xi1>
    %c1_i32_29 = arith.constant 1 : i32
    %c0_i32_30 = arith.constant 0 : i32
    %118 = vector.broadcast %c1_i32_29 : i32 to vector<2x896xi32>
    %119 = vector.broadcast %c0_i32_30 : i32 to vector<2x896xi32>
    %120 = arith.select %117, %118, %119 : vector<2x896xi1>, vector<2x896xi32>
    %121 = vector.shape_cast %120 : vector<2x896xi32> to vector<1x2x896xi32>
    %cst_31 = arith.constant dense<0> : vector<1xi32>
    %122 = vector.multi_reduction <add>, %121, %cst_31 [1, 2] : vector<1x2x896xi32> to vector<1xi32>
    %123 = vector.shape_cast %122 : vector<1xi32> to vector<1x1x1xi32>
    %124 = vector.extract %123[0, 0, 0] : i32 from vector<1x1x1xi32>
    %125 = tpu.iota {dimensions = array<i32: 1>} : vector<1x128xi32>
    %c0_i32_32 = arith.constant 0 : i32
    %126 = vector.broadcast %c0_i32_32 : i32 to vector<1x128xi32>
    %127 = arith.cmpi eq, %125, %126 : vector<1x128xi32>
    %cst_33 = arith.constant 0.000000e+00 : f32
    %128 = vector.broadcast %32 : f32 to vector<1x128xf32>
    %129 = vector.broadcast %cst_33 : f32 to vector<1x128xf32>
    %130 = arith.select %127, %128, %129 : vector<1x128xi1>, vector<1x128xf32>
    %c0_34 = arith.constant 0 : index
    %c0_35 = arith.constant 0 : index
    %131 = vector.load %arg3[%c0_34, %c0_35] : memref<1x128xf32, #tpu.memory_space<vmem>>, vector<1x128xf32>
    tpu.vector_store %arg3[%c0_34, %c0_35], %130 {strides = array<i32>} : memref<1x128xf32, #tpu.memory_space<vmem>>, vector<1x128xf32>,
    %c0_i32_36 = arith.constant 0 : i32
    %132 = vector.broadcast %124 : i32 to vector<1x128xi32>
    %133 = vector.broadcast %c0_i32_36 : i32 to vector<1x128xi32>
    %134 = arith.select %127, %132, %133 : vector<1x128xi1>, vector<1x128xi32>
    %c0_37 = arith.constant 0 : index
    %c0_38 = arith.constant 0 : index
    %135 = vector.load %arg4[%c0_37, %c0_38] : memref<1x128xi32, #tpu.memory_space<vmem>>, vector<1x128xi32>
    tpu.vector_store %arg4[%c0_37, %c0_38], %134 {strides = array<i32>} : memref<1x128xi32, #tpu.memory_space<vmem>>, vector<1x128xi32>,
    return
  }
  func.func @transform_0(%arg0: i32) -> (i32, i32) {
    %c0_i32 = arith.constant 0 : i32
    %c0_i32_0 = arith.constant 0 : i32
    return %c0_i32, %arg0 : i32, i32
  }
  func.func @transform_1(%arg0: i32) -> (i32, i32) {
    %c0_i32 = arith.constant 0 : i32
    %c0_i32_0 = arith.constant 0 : i32
    return %c0_i32, %arg0 : i32, i32
  }
  func.func @transform_2(%arg0: i32) -> (i32, i32) {
    %c0_i32 = arith.constant 0 : i32
    %c0_i32_0 = arith.constant 0 : i32
    return %c0_i32, %arg0 : i32, i32
  }
  func.func @transform_3(%arg0: i32) -> (i32, i32) {
    %c0_i32 = arith.constant 0 : i32
    %c0_i32_0 = arith.constant 0 : i32
    return %c0_i32, %arg0 : i32, i32
  }
}

</mosaic_0001>

<bundles_post_ra>
// kernel: tpu_custom_call.1
= control target key start
LH: loop header
LB: loop body
LE: loop exit
PB: predicated region body
PF: predicated region fallthrough
CT: control target
= control target key end

     0   :  { %9 = vsyncpa [#allocation3], 0  ;;  %s2975_s0 = inlined_call_operand.hbm [shape: f32[2,896], index: 0, kind: input, shape index: {}]   ;;  %s2976_s1 = inlined_call_operand.hbm [shape: s8[2,896], index: 1, kind: input, shape index: {}]   ;;  %s2977_s2 = inlined_call_operand.hbm [shape: f32[1,128], index: 2, kind: output, shape index: {0}]   ;;  %s2978_s3 = inlined_call_operand.hbm [shape: s32[1,128], index: 3, kind: output, shape index: {1}]  }
   0x1   :  { %10 = vsyncpa [#allocation6], 0 }
   0x2   :  { %11 = vsyncpa [#allocation4], 0 }
   0x3   :  { %12 = vsyncpa [#allocation9], 0  ;;  %s18_s14 = sshll.u32 %s2975_s0, 4  ;;  %s1274_s15 = smov [#allocation2]   ;;  %s19_s14 = int_to_ptr.hbm [resolvable:$true] %s18_s14 }
   0x4   :  { %s20_s16 = sshll.u32 %s1274_s15, 4  ;;  %s29_s19 = sshll.u32 %s2976_s1, 4  ;;  %s21_s16 = int_to_ptr.vmem [resolvable:$true] %s20_s16  ;;  %s30_s19 = int_to_ptr.hbm [resolvable:$true] %s29_s19 }
   0x5   :  { %23 = dma.hbm_to_vmem [thread:$0]  %s19_s14, 224, %s21_s16, [#allocation3]  }
   0x6   :  { %s1275_s20 = smov [#allocation5]  }
   0x7   :  { %s31_s21 = sshll.u32 %s1275_s20, 4  ;;  %s32_s21 = int_to_ptr.vmem [resolvable:$true] %s31_s21 }
   0x8   :  { %34 = dma.hbm_to_vmem [thread:$0]  %s30_s19, 112, %s32_s21, [#allocation6]  }
   0x9   :  { %1266 = dma.done.wait [#allocation3], 224  }
   0xa   :  { %1267 = vsyncadd [#allocation3], 4294967072 }
   0xb   :  { %1268 = dma.done.wait [#allocation6], 112  }
   0xc   :  { %1269 = vsyncadd [#allocation6], 4294967184  ;;  %v54_v0 = vlaneseq  ;;  %v1276_v1 = vmov 0.0   ;;  %v1334_v17 = vld [vmem:[#allocation2] sm:$0xff]  ;;  %v1336_v18 = vld [vmem:[#allocation2 + $0x8] sm:$0x3f] }
   0xd   :  { %202 = vst [vmem:[#allocation1 + $0x30] ss:$2 sm:$0xff] %v1276_v1  ;;  %v1338_v19 = vld [vmem:[#allocation5] sm:$0x7f]  ;;  %vm2979_vm0 = vcmask 1043456   ;;  %v3043_v27 = vmov 0  }
   0xe   :  { %v1313_v2 = vand.u32 127, %v54_v0  ;;  %v161_v28 = vrot.slane %v3043_v27, 4  ;;  %177 = vst [vmem:[#allocation1] ss:$2 sm:$0xff] %v1334_v17  ;;  %v46_v35 = vunpack.c.0.s8 %v1338_v19  ;;  %v47_v36 = vunpack.c.1.s8 %v1338_v19  ;;  %s1278_s0 = smov 1   ;;  %s1279_s1 = smov 127  }
   0xf   :  { %179 = vst [vmem:[#allocation1 + $0x10] ss:$2 sm:$0xff] %v1336_v18  ;;  %v48_v60 = vunpack.c.2.s8 %v1338_v19  ;;  %v3080_v62 = vmov 0  ;;  %s1281_s22 = smov 2   ;;  %s1282_s23 = smov 126  }
  0x10   :  { %v99_v3 = vcvt.s32.f32 %v1313_v2  ;;  %v59_v4 = vadd.s32 512, %v1313_v2  ;;  %v57_v5 = vadd.s32 256, %v1313_v2  ;;  %v1319_v6 = vadd.s32 128, %v1313_v2  ;;  %s1283_s24 = smov 4   ;;  %s1284_s25 = smov 124  }
  0x11   :  { %v1322_v7 = vadd.s32 640, %v1313_v2  ;;  %v1325_v8 = vadd.s32 384, %v1313_v2  ;;  %v1328_v9 = vadd.s32 768, %v1313_v2  ;;  %vm71_vm1 = vcmp.lt.s32.totalorder %v1313_v2, 56  ;;  %s1285_s26 = smov [#allocation7]   ;;  %s1119_s30 = sshll.u32 %s2977_s2, 4  ;;  %s1120_s30 = int_to_ptr.hbm [resolvable:$true] %s1119_s30 }
  0x12   :  { %v106_v10 = vadd.f32 0.5, %v99_v3  ;;  %v103_v11 = vcvt.s32.f32 %v59_v4  ;;  %v101_v12 = vcvt.s32.f32 %v57_v5  ;;  %v100_v13 = vcvt.s32.f32 %v1319_v6  ;;  %s1117_s27 = sshll.u32 %s1285_s26, 4  ;;  %s1286_s5 = smov [#allocation8]   ;;  %s1118_s27 = int_to_ptr.vmem [resolvable:$true] %s1117_s27 }
  0x13   :  { %v104_v14 = vcvt.s32.f32 %v1322_v7  ;;  %v102_v15 = vcvt.s32.f32 %v1325_v8  ;;  %v105_v16 = vcvt.s32.f32 %v1328_v9  ;;  %vm78_vm2 = vcmp.ge.s32.totalorder %v1313_v2, 7  ;;  %s1128_s6 = sshll.u32 %s1286_s5, 4  ;;  %s1130_s9 = sshll.u32 %s2978_s3, 4  ;;  %s1129_s6 = int_to_ptr.vmem [resolvable:$true] %s1128_s6  ;;  %s1131_s9 = int_to_ptr.hbm [resolvable:$true] %s1130_s9 }
  0x14   :  { %v113_v20 = vmul.f32 0.14285715, %v106_v10  ;;  %v110_v21 = vadd.f32 0.5, %v103_v11  ;;  %v108_v22 = vadd.f32 0.5, %v101_v12  ;;  %v107_v23 = vadd.f32 0.5, %v100_v13 }
  0x15   :  { %v111_v24 = vadd.f32 0.5, %v104_v14  ;;  %v109_v25 = vadd.f32 0.5, %v102_v15  ;;  %v112_v26 = vadd.f32 0.5, %v105_v16  ;;  %vm1357_vm3 = vcmp.gt.s32.totalorder %v46_v35, 0 }
  0x16   :  { %v120_v29 = vfloor.f32 %v113_v20  ;;  %v117_v30 = vmul.f32 0.14285715, %v110_v21  ;;  %v115_v31 = vmul.f32 0.14285715, %v108_v22  ;;  %v114_v32 = vmul.f32 0.14285715, %v107_v23 }
  0x17   :  { %v118_v33 = vmul.f32 0.14285715, %v111_v24  ;;  %v116_v34 = vmul.f32 0.14285715, %v109_v25  ;;  %v119_v47 = vmul.f32 0.14285715, %v112_v26 }
  0x18   :  { %v127_v37 = vmul.f32 7.0, %v120_v29  ;;  %v124_v38 = vfloor.f32 %v117_v30  ;;  %v122_v39 = vfloor.f32 %v115_v31  ;;  %v121_v40 = vfloor.f32 %v114_v32  ;;  %v181_v56 = vld.sshfl [vmem:[#allocation1 + $0x8] sm:$0xff pattern:$0x75643120] }
  0x19   :  { %v125_v41 = vfloor.f32 %v118_v33  ;;  %v123_v42 = vfloor.f32 %v116_v34  ;;  %v166_v49 = vsel %vm2979_vm0, 0, %v161_v28  ;;  %vm1368_vm4 = vcmp.gt.s32.totalorder %v47_v36, 0  ;;  %v180_v58 = vld.sshfl [vmem:[#allocation1] sm:$0xff pattern:$0x75643120] }
  0x1a   :  { %v1354_v43 = vsub.f32 %v99_v3, %v127_v37  ;;  %v131_v44 = vmul.f32 7.0, %v124_v38  ;;  %v129_v45 = vmul.f32 7.0, %v122_v39  ;;  %v128_v46 = vmul.f32 7.0, %v121_v40  ;;  %v182_v63 = vld.sshfl [vmem:[#allocation1 + $0x10] sm:$0xff pattern:$0x75643120] }
  0x1b   :  { %vm85_vm5 = vcmp.lt.s32.totalorder %v1313_v2, 49  ;;  %v132_v53 = vmul.f32 7.0, %v125_v41  ;;  %v130_v54 = vmul.f32 7.0, %v123_v42  ;;  %v155_v55 = vsel %vm71_vm1, 1, %v3043_v27 }
  0x1c   :  { %240 = vrot.lane.b32.xlu0 %v1354_v43, %s1278_s0  ;;  %v1364_v50 = vsub.f32 %v103_v11, %v131_v44  ;;  %v1366_v51 = vsub.f32 %v101_v12, %v129_v45  ;;  %vm92_vm6 = vmand %vm78_vm2, %vm85_vm5  ;;  %v165_v57 = vsel %vm2979_vm0, %v155_v55, %v161_v28  ;;  %vm169_vm7 = vcmp.ne.s32.totalorder %v166_v49, 0  ;;  %v1426_v7 = vld.sshfl [vmem:[#allocation1 + $0x30] sm:$0xff pattern:$0x75316420] }
  0x1d   :  { %v1017_v59 = vsel %vm92_vm6, 1, %v3043_v27  ;;  %v126_v61 = vfloor.f32 %v119_v47  ;;  %vm168_vm8 = vcmp.ne.s32.totalorder %v165_v57, 0  ;;  %vm1386_vm9 = vmand %vm1368_vm4, %vm169_vm7  ;;  %v1393_v1 = vsub.f32 %v100_v13, %v128_v46  ;;  %3088 = vst [vmem:[#allocation16_spill] sm:$0xff] %v1426_v7 }
  0x1e   :  { %248 = vrot.lane.b32.xlu2 %v1364_v50, %s1278_s0  ;;  %244 = vrot.lane.b32.xlu1 %v1366_v51, %s1278_s0  ;;  %v3081_v62 = vsel %vm1386_vm9, 4294967295, %v3080_v62  ;;  %v1026_v0 = vsel %vm2979_vm0, %v1017_v59, %v161_v28  ;;  %vm171_vm10 = vmand %vm1357_vm3, %vm168_vm8  ;;  %v189_v3 = vsel %vm1386_vm9, %v181_v56, 0.0  ;;  %vm52_vm12 = vcmp.gt.s32.totalorder %v48_v60, 0 }
  0x1f   :  { %3082 = vst [vmem:[#allocation14_spill] sm:$0xff] %v3081_v62  ;;  %vm1029_vm11 = vcmp.ne.s32.totalorder %v1026_v0, 0  ;;  %v188_v4 = vsel %vm171_vm10, %v180_v58, 0.0  ;;  %v3083_v5 = vmov 0  ;;  %v1407_v6 = vsub.f32 %v104_v14, %v132_v53  ;;  %vm1414_vm14 = vmand %vm52_vm12, %vm169_vm7 }
  0x20   :  { %198 = vst [vmem:[#allocation1 + $0x10] ss:$2 sm:$0xff] %v189_v3  ;;  %vm1401_vm13 = vmand %vm1357_vm3, %vm1029_vm11  ;;  %v1411_v10 = vsub.f32 %v102_v15, %v130_v54  ;;  %v3085_v11 = vmov 0  ;;  %v190_v12 = vsel %vm1414_vm14, %v182_v63, 0.0  ;;  %v133_v13 = vmul.f32 7.0, %v126_v61 }
  0x21   :  { %v3084_v5 = vsel %vm1401_vm13, 4294967295, %v3083_v5  ;;  %196 = vst [vmem:[#allocation1] ss:$2 sm:$0xff] %v188_v4  ;;  %v3086_v11 = vsel %vm1414_vm14, 4294967295, %v3085_v11  ;;  %v1151_v38 = vadd.f32 -1.0, %v1407_v6  ;;  %vm2982_vm15 = vcmp.lt.s32.totalorder %v1313_v2, 1 }
  0x22   :  { %3087 = vst [vmem:[#allocation15_spill] sm:$0xff] %v3086_v11  ;;  %v1430_v8 = vsub.f32 %v105_v16, %v133_v13  ;;  %vm267_vm1 = vcmp.eq.f32.partialorder %v1407_v6, 0.0  ;;  %v1148_v44 = vadd.f32 -1.0, %v1366_v51  ;;  %v1147_v45 = vadd.f32 -1.0, %v1393_v1 }
  0x23   :  { %200 = vst [vmem:[#allocation1 + $0x20] ss:$2 sm:$0xff] %v190_v12  ;;  %v281_v40 = vsel %vm267_vm1, 6.0, %v1151_v38  ;;  %vm264_vm2 = vcmp.eq.f32.partialorder %v1366_v51, 0.0  ;;  %vm263_vm3 = vcmp.eq.f32.partialorder %v1393_v1, 0.0  ;;  %v3089_v46 = vmov 0 }
  0x24   :  { %242 = vrot.lane.b32.xlu0 %v1393_v1, %s1278_s0  ;;  %v1149_v47 = vadd.f32 -1.0, %v1411_v10  ;;  %vm265_vm5 = vcmp.eq.f32.partialorder %v1411_v10, 0.0  ;;  %v278_v49 = vsel %vm264_vm2, 6.0, %v1148_v44  ;;  %v277_v52 = vsel %vm263_vm3, 6.0, %v1147_v45 }
  0x25   :  { %v1150_v53 = vadd.f32 -1.0, %v1364_v50  ;;  %vm2980_vm6 = vcmp.ge.f32.partialorder %v1407_v6, 1.0  ;;  %vm2985_vm7 = vmmov 1   ;;  %v3091_v54 = vmov 0 }
  0x26   :  { %250 = vrot.lane.b32.xlu2 %v1407_v6, %s1278_s0  ;;  %246 = vrot.lane.b32.xlu1 %v1411_v10, %s1278_s0  ;;  %vm266_vm10 = vcmp.eq.f32.partialorder %v1364_v50, 0.0  ;;  %vm2981_vm11 = vcmp.le.f32.partialorder %v1407_v6, 5.0  ;;  %v279_v58 = vsel %vm265_vm5, 6.0, %v1149_v47  ;;  %v3093_v59 = vmov 0 }
  0x27   :  { %v1432_v14 = vld.sshfl [vmem:[#allocation1 + $0x10] sm:$0xff pattern:$0x75316420]  ;;  %v1434_v15 = vld.sshfl [vmem:[#allocation1 + $0x18] sm:$0xff pattern:$0x75316420] }
  0x28   :  { %v1436_v19 = vld.sshfl [vmem:[#allocation1] sm:$0xff pattern:$0x75316420]  ;;  %v1438_v20 = vld.sshfl [vmem:[#allocation1 + $0x8] sm:$0xff pattern:$0x75316420] }
  0x29   :  { %353 = vst [vmem:[#allocation1] ss:$4 sm:$0xff] %v1334_v17  ;;  %v3095_v60 = vmov 0  ;;  %v3097_v63 = vmov 0  ;;  %v280_v0 = vsel %vm266_vm10, 6.0, %v1150_v53  ;;  %v1146_v12 = vadd.f32 -1.0, %v1354_v43 }
  0x2a   :  { %v1441_v21 = vld.sshfl [vmem:[#allocation1 + $0x20] sm:$0xff pattern:$0x75316420]  ;;  %v1443_v22 = vld.sshfl [vmem:[#allocation1 + $0x28] sm:$0xff pattern:$0x75316420] }
  0x2b   :  { %355 = vst [vmem:[#allocation1 + $0x20] ss:$4 sm:$0xff] %v1336_v18  ;;  %v3099_v13 = vmov 0  ;;  %vm262_vm0 = vcmp.eq.f32.partialorder %v1354_v43, 0.0  ;;  %v3124_v38 = vmov 0  ;;  %v3133_v45 = vmov 0 }
  0x2c   :  { %252 = vrot.lane.b32.xlu0 %v1430_v8, %s1278_s0  ;;  %v3137_v47 = vmov 0 }
  0x30   :  { %v357_v9 = vld.sshfl [vmem:[#allocation1 + $0x8] sm:$0xff pattern:$0x73625140]  ;;  %v356_v16 = vld.sshfl [vmem:[#allocation1] sm:$0xff pattern:$0x73625140] }
  0x31   :  { %372 = vrot.lane.b32.xlu2 %v357_v9, %s1278_s0  ;;  %370 = vrot.lane.b32.xlu1 %v356_v16, %s1278_s0  ;;  %v358_v23 = vld.sshfl [vmem:[#allocation1 + $0x10] sm:$0xff pattern:$0x73625140]  ;;  %v359_v24 = vld.sshfl [vmem:[#allocation1 + $0x18] sm:$0xff pattern:$0x73625140] }
  0x32   :  { %v360_v25 = vld.sshfl [vmem:[#allocation1 + $0x20] sm:$0xff pattern:$0x73625140]  ;;  %441 = vst [vmem:[#allocation1] ss:$4 sm:$0xff] %v1334_v17  ;;  %v3101_v9 = vmov 0 }
  0x33   :  { %v361_v26 = vld.sshfl [vmem:[#allocation1 + $0x28] sm:$0xff pattern:$0x73625140]  ;;  %v362_v28 = vld.sshfl [vmem:[#allocation1 + $0x30] sm:$0xff pattern:$0x73625140] }
  0x34   :  { %374 = vrot.lane.b32.xlu0 %v358_v23, %s1278_s0  ;;  %443 = vst [vmem:[#allocation1 + $0x20] ss:$4 sm:$0xff] %v1336_v18  ;;  %v3103_v16 = vmov 0  ;;  %v3105_v23 = vmov 0 }
  0x39   :  { %378 = vrot.lane.b32.xlu2 %v360_v25, %s1278_s0  ;;  %376 = vrot.lane.b32.xlu1 %v359_v24, %s1278_s0  ;;  %v445_v29 = vld.sshfl [vmem:[#allocation1 + $0x8] sm:$0xff pattern:$0x73625140]  ;;  %v446_v30 = vld.sshfl [vmem:[#allocation1 + $0x10] sm:$0xff pattern:$0x73625140] }
  0x3a   :  { %v447_v31 = vld.sshfl [vmem:[#allocation1 + $0x18] sm:$0xff pattern:$0x73625140]  ;;  %v444_v35 = vld.sshfl [vmem:[#allocation1] sm:$0xff pattern:$0x73625140] }
  0x3b   :  { %v448_v32 = vld.sshfl [vmem:[#allocation1 + $0x20] sm:$0xff pattern:$0x73625140]  ;;  %v449_v33 = vld.sshfl [vmem:[#allocation1 + $0x28] sm:$0xff pattern:$0x73625140] }
  0x3c   :  { %380 = vrot.lane.b32.xlu0 %v361_v26, %s1278_s0  ;;  %v450_v34 = vld.sshfl [vmem:[#allocation1 + $0x30] sm:$0xff pattern:$0x73625140]  ;;  %v3107_v24 = vmov 0  ;;  %v3109_v25 = vmov 0  ;;  %v276_v26 = vsel %vm262_vm0, 6.0, %v1146_v12 }
  0x3d   :  { %vm3002_vm0 = vcmp.le.f32.partialorder %v1366_v51, 5.0 }
  0x41   :  { %382 = vrot.lane.b32.xlu1 %v362_v28, %s1278_s0  ;;  %460 = vrot.lane.b32.xlu2 %v445_v29, %s1279_s1 }
  0x44   :  { %462 = vrot.lane.b32.xlu0 %v446_v30, %s1279_s1 }
  0x49   :  { %464 = vrot.lane.b32.xlu1 %v447_v31, %s1279_s1  ;;  %466 = vrot.lane.b32.xlu2 %v448_v32, %s1279_s1  ;;  %v3113_v31 = vmov 0  ;;  %v3116_v32 = vmov 0 }
  0x4c   :  { %468 = vrot.lane.b32.xlu0 %v449_v33, %s1279_s1 }
  0x51   :  { %470 = vrot.lane.b32.xlu1 %v450_v34, %s1279_s1  ;;  %458 = vrot.lane.b32.xlu2 %v444_v35, %s1279_s1  ;;  %v1152_v34 = vadd.f32 -1.0, %v1430_v8  ;;  %v3119_v35 = vmov 0 }
  0x78   :  { %v249_v36 = vpop.permute.xlu2 %248 }
  0x80   :  { %v1457_v37 = vpop.permute.xlu2 %250 }
  0x81   :  { %v256_v41 = vsel %vm2982_vm15, %v249_v36, %v1457_v37 }
  0x82   :  { %vm1469_vm4 = vcmp.eq.f32.partialorder %v256_v41, %v281_v40 }
  0x83   :  { %v3090_v46 = vsel %vm1469_vm4, 4294967295, %v3089_v46  ;;  %vm1482_vm8 = vmxor %vm1469_vm4, %vm2985_vm7 }
  0x84   :  { %v3092_v54 = vsel %vm1482_vm8, 4294967295, %v3091_v54  ;;  %vm1504_vm2 = vmand %vm1469_vm4, %vm2980_vm6  ;;  %vm2987_vm6 = vcmp.ge.f32.partialorder %v1393_v1, 1.0 }
  0x85   :  { %v3098_v63 = vsel %vm1504_vm2, 4294967295, %v3097_v63  ;;  %vm1517_vm3 = vmand %vm1482_vm8, %vm2981_vm11  ;;  %vm3118_vm8 = vcmp.lt.s32.totalorder %v1313_v2, 1 }
  0x86   :  { %v3100_v13 = vsel %vm1517_vm3, 4294967295, %v3099_v13  ;;  %vm3121_vm3 = vcmp.ge.f32.partialorder %v1366_v51, 1.0 }
  0x8b   :  { %v1474_v48 = vpop.permute.xlu2 %372 }
  0x8e   :  { %v241_v39 = vpop.permute.xlu0 %240 }
  0x90   :  { %v245_v42 = vpop.permute.xlu1 %244 }
  0x93   :  { %v1561_v29 = vpop.permute.xlu2 %378 }
  0x96   :  { %v243_v55 = vpop.permute.xlu0 %242 }
  0x97   :  { %v259_v56 = vsel %vm2982_vm15, %v243_v55, %v245_v42  ;;  %v260_v57 = vsel %vm2982_vm15, %v241_v39, %v243_v55 }
  0x98   :  { %vm1492_vm12 = vcmp.eq.f32.partialorder %v260_v57, %v277_v52  ;;  %vm1496_vm1 = vcmp.eq.f32.partialorder %v259_v56, %v278_v49  ;;  %v247_v61 = vpop.permute.xlu1 %246  ;;  %v3139_v49 = vmov 0  ;;  %v3149_v57 = vmov 0 }
  0x99   :  { %v3094_v59 = vsel %vm1492_vm12, 4294967295, %v3093_v59  ;;  %v3096_v60 = vsel %vm1496_vm1, 4294967295, %v3095_v60  ;;  %v257_v3 = vsel %vm2982_vm15, %v247_v61, %v249_v36  ;;  %v258_v4 = vsel %vm2982_vm15, %v245_v42, %v247_v61  ;;  %vm1524_vm5 = vmxor %vm1492_vm12, %vm2985_vm7 }
  0x9a   :  { %v3102_v9 = vsel %vm1524_vm5, 4294967295, %v3101_v9  ;;  %vm1528_vm10 = vcmp.eq.f32.partialorder %v258_v4, %v279_v58  ;;  %vm1537_vm11 = vmxor %vm1496_vm1, %vm2985_vm7  ;;  %vm2993_vm15 = vcmp.le.f32.partialorder %v1393_v1, 5.0  ;;  %vm1542_vm14 = vcmp.eq.f32.partialorder %v257_v3, %v280_v0 }
  0x9b   :  { %v3104_v16 = vsel %vm1528_vm10, 4294967295, %v3103_v16  ;;  %v3106_v23 = vsel %vm1537_vm11, 4294967295, %v3105_v23  ;;  %v3108_v24 = vsel %vm1542_vm14, 4294967295, %v3107_v24  ;;  %vm1549_vm9 = vmxor %vm1528_vm10, %vm2985_vm7  ;;  %v1668_v52 = vpop.permute.xlu2 %460 }
  0x9c   :  { %v3110_v25 = vsel %vm1549_vm9, 4294967295, %v3109_v25  ;;  %vm1557_vm13 = vmand %vm1492_vm12, %vm2987_vm6  ;;  %vm3115_vm12 = vmmov 1  }
  0x9d   :  { %vm1567_vm7 = vmand %vm1524_vm5, %vm2993_vm15  ;;  %vm268_vm5 = vcmp.eq.f32.partialorder %v1430_v8, 0.0 }
  0x9e   :  { %v253_v30 = vpop.permute.xlu0 %252  ;;  %v3114_v31 = vsel %vm1567_vm7, 4294967295, %v3113_v31  ;;  %vm1579_vm9 = vmxor %vm1542_vm14, %vm3115_vm12  ;;  %v282_v40 = vsel %vm268_vm5, 6.0, %v1152_v34 }
  0x9f   :  { %v3117_v32 = vsel %vm1579_vm9, 4294967295, %v3116_v32  ;;  %v261_v33 = vsel %vm3118_vm8, %v253_v30, %v241_v39  ;;  %vm1600_vm8 = vmand %vm1496_vm1, %vm3121_vm3  ;;  %vm3005_vm3 = vcmp.ge.f32.partialorder %v1364_v50, 1.0  ;;  %vm3128_vm1 = vcmp.lt.s32.totalorder %v1313_v2, 1 }
  0xa0   :  { %vm1586_vm15 = vcmp.eq.f32.partialorder %v261_v33, %v276_v26  ;;  %vm1616_vm7 = vmand %vm1537_vm11, %vm3002_vm0  ;;  %v255_v41 = vsel %vm3128_vm1, %v1457_v37, %v253_v30  ;;  %vm3129_vm11 = vcmp.ge.f32.partialorder %v1411_v10, 1.0  ;;  %vm3135_vm0 = vcmp.ge.f32.partialorder %v1407_v6, 1.0 }
  0xa1   :  { %v3120_v35 = vsel %vm1586_vm15, 4294967295, %v3119_v35  ;;  %vm1607_vm2 = vmxor %vm1586_vm15, %vm3115_vm12 }
  0xa2   :  { %v3125_v38 = vsel %vm1607_vm2, 4294967295, %v3124_v38  ;;  %vm327_vm6 = vmor %vm1600_vm8, %vm1616_vm7  ;;  %vm3132_vm7 = vcmp.le.f32.partialorder %v1407_v6, 5.0 }
  0xa3   :  { %v1624_v42 = vpop.permute.xlu1 %370  ;;  %vm307_vm5 = vmand %vm1528_vm10, %vm3129_vm11  ;;  %vm3136_vm11 = vnez %v3092_v54  ;;  %vm3142_vm10 = vnez %v3110_v25  ;;  %v393_v55 = vsel %vm327_vm6, 1, %v3043_v27  ;;  %vm3151_vm6 = vnez %v3114_v31 }
  0xa4   :  { %vm1640_vm1 = vmand %vm1542_vm14, %vm3005_vm3  ;;  %vm1660_vm3 = vcmp.eq.f32.partialorder %v255_v41, %v282_v40  ;;  %vm3141_vm14 = vcmp.le.f32.partialorder %v1411_v10, 5.0  ;;  %v400_v0 = vperm.slane %v393_v55, 0 }
  0xa5   :  { %vm1648_vm8 = vmand %vm1469_vm4, %vm3132_vm7  ;;  %v3140_v49 = vsel %vm1660_vm3, 4294967295, %v3139_v49  ;;  %vm3143_vm4 = vcmp.le.f32.partialorder %v1364_v50, 5.0 }
  0xa6   :  { %v375_v44 = vpop.permute.xlu0 %374  ;;  %v3134_v45 = vsel %vm1648_vm8, 4294967295, %v3133_v45  ;;  %vm1656_vm2 = vmand %vm3136_vm11, %vm3135_vm0  ;;  %vm297_vm11 = vcmp.le.f32.partialorder %v1354_v43, 5.0 }
  0xa7   :  { %v3138_v47 = vsel %vm1656_vm2, 4294967295, %v3137_v47  ;;  %vm321_vm7 = vmand %vm3142_vm10, %vm3141_vm14  ;;  %vm3146_vm2 = vnez %v3098_v63  ;;  %vm3147_vm14 = vnez %v3100_v13 }
  0xa8   :  { %vm1674_vm8 = vmand %vm1579_vm9, %vm3143_vm4  ;;  %vm290_vm4 = vcmp.ge.f32.partialorder %v1354_v43, 1.0 }
  0xa9   :  { %vm328_vm0 = vmor %vm307_vm5, %vm321_vm7  ;;  %vm3156_vm7 = vcmp.lt.s32.totalorder %v1313_v2, 1 }
  0xaa   :  { %vm3148_vm10 = vmor %vm3146_vm2, %vm3147_vm14  ;;  %v394_v58 = vsel %vm328_vm0, 1, %v3043_v27  ;;  %vm3021_vm14 = vcmp.le.f32.partialorder %v1430_v8, 5.0 }
  0xab   :  { %v396_v56 = vsel %vm3148_vm10, 1, %v3043_v27  ;;  %vm1689_vm15 = vmxor %vm1660_vm3, %vm3115_vm12  ;;  %v401_v63 = vperm.slane %v394_v58, 0  ;;  %v377_v3 = vpop.permute.xlu1 %376  ;;  %vm3153_vm12 = vnez %v3120_v35 }
  0xac   :  { %v3150_v57 = vsel %vm1689_vm15, 4294967295, %v3149_v57  ;;  %vm3152_vm5 = vmor %vm1557_vm13, %vm3151_vm6  ;;  %v403_v12 = vperm.slane %v396_v56, 0  ;;  %vm3016_vm13 = vcmp.ge.f32.partialorder %v1430_v8, 1.0  ;;  %v387_v13 = vsel %vm3156_vm7, %v375_v44, %v377_v3 }
  0xad   :  { %v392_v61 = vsel %vm3152_vm5, 1, %v3043_v27  ;;  %vm329_vm2 = vmor %vm1640_vm1, %vm1674_vm8  ;;  %vm3157_vm1 = vnez %v3125_v38  ;;  %vm1737_vm5 = vcmp.eq.s32.totalorder %v401_v63, 1  ;;  %v1794_v63 = vpop.permute.xlu2 %466 }
  0xae   :  { %vm1709_vm10 = vmand %vm3153_vm12, %vm297_vm11  ;;  %v399_v28 = vperm.slane %v392_v61, 0  ;;  %v395_v31 = vsel %vm329_vm2, 1, %v3043_v27  ;;  %v381_v33 = vpop.permute.xlu0 %380  ;;  %v415_v37 = vsel %vm1737_vm5, %v387_v13, -inf }
  0xaf   :  { %vm1720_vm8 = vmand %vm3157_vm1, %vm290_vm4  ;;  %v402_v56 = vperm.slane %v395_v31, 0  ;;  %v428_v13 = vrot.slane %v415_v37, 2 }
  0xb0   :  { %vm3160_vm0 = vmmov %vm3156_vm7 }
  0xb1   :  { %v388_v30 = vsel %vm3160_vm0, %v1474_v48, %v375_v44  ;;  %vm1733_vm6 = vmand %vm3153_vm12, %vm290_vm4  ;;  %vm3176_vm12 = vnez %v3134_v45 }
  0xb2   :  { %vm3165_vm7 = vmmov %vm3160_vm0 }
  0xb3   :  { %v385_v39 = vsel %vm3165_vm7, %v1561_v29, %v381_v33  ;;  %vm1748_vm2 = vmand %vm1660_vm3, %vm3016_vm13  ;;  %vm1766_vm13 = vcmp.eq.s32.totalorder %v403_v12, 1  ;;  %vm3175_vm7 = vnez %v3138_v47  ;;  %v383_v34 = vpop.permute.xlu1 %382  ;;  %vm1813_vm3 = vcmp.eq.s32.totalorder %v402_v56, 1 }
  0xb4   :  { %vm3168_vm4 = vmmov %vm3160_vm0  ;;  %vm1756_vm0 = vcmp.eq.s32.totalorder %v400_v0, 1  ;;  %v417_v58 = vsel %vm1766_vm13, %v385_v39, -inf }
  0xb5   :  { %v389_v41 = vsel %vm3168_vm4, %v1624_v42, %v1474_v48  ;;  %vm1774_vm4 = vmand %vm3157_vm1, %vm297_vm11  ;;  %v414_v55 = vsel %vm1756_vm0, %v388_v30, -inf  ;;  %vm1790_vm1 = vcmp.eq.s32.totalorder %v399_v28, 1  ;;  %v429_v31 = vrot.slane %v417_v58, 6 }
  0xb6   :  { %vm324_vm5 = vmand %vm1689_vm15, %vm3021_vm14  ;;  %v413_v0 = vsel %vm1790_vm1, %v389_v41, -inf  ;;  %vm3179_vm14 = vcmp.lt.s32.totalorder %v1313_v2, 1  ;;  %v427_v30 = vrot.slane %v414_v55, 4  ;;  %vm3181_vm1 = vnez %v3094_v59  ;;  %v463_v55 = vpop.permute.xlu0 %462 }
  0xb7   :  { %vm325_vm13 = vmor %vm1733_vm6, %vm1774_vm4  ;;  %v386_v12 = vsel %vm3179_vm14, %v377_v3, %v1561_v29  ;;  %vm3180_vm6 = vcmp.le.f32.partialorder %v1393_v1, 5.0  ;;  %v384_v3 = vsel %vm3179_vm14, %v381_v33, %v383_v34  ;;  %v426_v44 = vrot.slane %v413_v0, 6 }
  0xb8   :  { %vm331_vm11 = vmor %vm1748_vm2, %vm324_vm5  ;;  %v391_v28 = vsel %vm325_vm13, 1, %v3043_v27  ;;  %vm3185_vm5 = vcmp.ge.f32.partialorder %v1393_v1, 1.0  ;;  %v416_v37 = vsel %vm1813_vm3, %v386_v12, -inf }
  0xb9   :  { %v397_v36 = vsel %vm331_vm11, 1, %v3043_v27  ;;  %v398_v39 = vperm.slane %v391_v28, 0  ;;  %vm333_vm4 = vmand %vm3181_vm1, %vm3180_vm6  ;;  %vm3186_vm11 = vnez %v3102_v9  ;;  %vm3187_vm1 = vcmask 1045508  }
  0xba   :  { %v404_v29 = vperm.slane %v397_v36, 0  ;;  %vm3184_vm2 = vmmov %vm3179_vm14  ;;  %v433_v53 = vsel %vm3187_vm1, %v427_v30, %v428_v13  ;;  %vm3188_vm14 = vcmp.le.f32.partialorder %v1366_v51, 5.0  ;;  %vm3194_vm1 = vcmp.le.f32.partialorder %v1411_v10, 5.0 }
  0xbb   :  { %v390_v40 = vsel %vm3184_vm2, %v383_v34, %v1624_v42  ;;  %vm340_vm13 = vmand %vm3186_vm11, %vm3185_vm5  ;;  %vm405_vm6 = vcmp.eq.s32.totalorder %v398_v39, 1  ;;  %vm3189_vm2 = vnez %v3096_v60  ;;  %vm3192_vm5 = vcmask 1041408   ;;  %v459_v34 = vpop.permute.xlu2 %458  ;;  %v465_v26 = vpop.permute.xlu1 %464 }
  0xbc   :  { %vm347_vm0 = vmor %vm333_vm4, %vm340_vm13  ;;  %vm411_vm15 = vcmp.eq.s32.totalorder %v404_v29, 1  ;;  %v412_v48 = vsel %vm405_vm6, %v390_v40, -inf  ;;  %v435_v56 = vsel %vm3192_vm5, %v416_v37, %v429_v31  ;;  %vm3195_vm4 = vnez %v3104_v16 }
  0xbd   :  { %v481_v33 = vsel %vm347_vm0, 1, %v3043_v27  ;;  %vm1834_vm9 = vmand %vm3189_vm2, %vm3188_vm14  ;;  %v418_v58 = vsel %vm411_vm15, %v384_v3, -inf  ;;  %vm3026_vm13 = vcmp.lt.s32.totalorder %v1313_v2, 127  ;;  %vm3198_vm6 = vcmask 1043456  }
  0xbe   :  { %vm3193_vm3 = vmmov %vm3192_vm5  ;;  %v488_v0 = vperm.slane %v481_v33, 0  ;;  %v430_v13 = vrot.slane %v418_v58, 4  ;;  %vm3199_vm14 = vcmp.ge.f32.partialorder %v1366_v51, 1.0  ;;  %vm3200_vm15 = vnez %v3106_v23  ;;  %v469_v12 = vpop.permute.xlu0 %468 }
  0xbf   :  { %v431_v61 = vsel %vm3193_vm3, %v412_v48, %v426_v44  ;;  %vm1844_vm0 = vmand %vm3195_vm4, %vm3194_vm1  ;;  %v477_v31 = vsel %vm3026_vm13, %v1668_v52, %v463_v55  ;;  %vm3201_vm3 = vcmp.ge.f32.partialorder %v1411_v10, 1.0  ;;  %vm3202_vm1 = vnez %v3110_v25 }
  0xc0   :  { %v434_v28 = vsel %vm3198_vm6, %v431_v61, %v433_v53  ;;  %vm341_vm5 = vmand %vm3200_vm15, %vm3199_vm14  ;;  %vm3204_vm14 = vcmask 1043456   ;;  %vm1877_vm13 = vcmp.eq.s32.totalorder %v488_v0, 1 }
  0xc1   :  { %v1855_v30 = vmax.f32 %v1334_v17, %v434_v28  ;;  %vm342_vm4 = vmand %vm3202_vm1, %vm3201_vm3  ;;  %v436_v39 = vsel %vm3204_vm14, %v435_v56, %v430_v13  ;;  %v502_v40 = vsel %vm1877_vm13, %v477_v31, -inf }
  0xc2   :  { %vm3203_vm6 = vmor %vm1709_vm10, %vm1720_vm8  ;;  %v1874_v41 = vmax.f32 %v1336_v18, %v436_v39  ;;  %vm3208_vm10 = vcmp.lt.s32.totalorder %v1313_v2, 127  ;;  %vm3209_vm8 = vcmp.le.f32.partialorder %v1364_v50, 5.0  ;;  %v515_v42 = vrot.slane %v502_v40, 6 }
  0xc3   :  { %v480_v36 = vsel %vm3203_vm6, 1, %v3043_v27  ;;  %vm348_vm11 = vmor %vm1834_vm9, %vm341_vm5  ;;  %587 = vst [vmem:[#allocation1] ss:$4 sm:$0xff] %v1855_v30  ;;  %v476_v53 = vsel %vm3208_vm10, %v463_v55, %v465_v26 }
  0xc4   :  { %vm349_vm3 = vmor %vm1844_vm0, %vm342_vm4  ;;  %v482_v4 = vsel %vm348_vm11, 1, %v3043_v27  ;;  %vm3210_vm11 = vnez %v3108_v24  ;;  %v487_v48 = vperm.slane %v480_v36, 0  ;;  %589 = vst [vmem:[#allocation1 + $0x20] ss:$4 sm:$0xff] %v1874_v41  ;;  %vm3213_vm0 = vnez %v3117_v32 }
  0xc5   :  { %vm3207_vm9 = vmor %vm3176_vm12, %vm3175_vm7  ;;  %v483_v44 = vsel %vm349_vm3, 1, %v3043_v27  ;;  %v489_v37 = vperm.slane %v482_v4, 0  ;;  %vm3212_vm7 = vcmp.ge.f32.partialorder %v1364_v50, 1.0 }
  0xc6   :  { %v485_v3 = vsel %vm3207_vm9, 1, %v3043_v27  ;;  %vm336_vm4 = vmand %vm3210_vm11, %vm3209_vm8  ;;  %v490_v45 = vperm.slane %v483_v44, 0  ;;  %vm3215_vm9 = vcmp.le.f32.partialorder %v1430_v8, 5.0 }
  0xc7   :  { %vm3211_vm12 = vmmov %vm3208_vm10  ;;  %vm496_vm6 = vcmp.eq.s32.totalorder %v489_v37, 1  ;;  %v492_v55 = vperm.slane %v485_v3, 0  ;;  %v471_v3 = vpop.permute.xlu1 %470 }
  0xc8   :  { %v475_v47 = vsel %vm3211_vm12, %v465_v26, %v1794_v63  ;;  %vm343_vm13 = vmand %vm3213_vm0, %vm3212_vm7  ;;  %vm497_vm3 = vcmp.eq.s32.totalorder %v490_v45, 1  ;;  %v503_v56 = vsel %vm496_vm6, %v476_v53, -inf  ;;  %vm3217_vm12 = vcmp.ge.f32.partialorder %v1430_v8, 1.0 }
  0xc9   :  { %vm3214_vm5 = vmmov %vm3208_vm10  ;;  %vm3216_vm10 = vnez %v3140_v49  ;;  %v504_v61 = vsel %vm497_vm3, %v475_v47, -inf  ;;  %v516_v0 = vrot.slane %v503_v56, 4  ;;  %vm3218_vm7 = vnez %v3150_v57 }
  0xca   :  { %v478_v33 = vsel %vm3214_vm5, %v459_v34, %v1668_v52  ;;  %vm350_vm14 = vmor %vm336_vm4, %vm343_vm13  ;;  %vm494_vm0 = vcmp.eq.s32.totalorder %v487_v48, 1  ;;  %v517_v52 = vrot.slane %v504_v61, 2  ;;  %v592_v31 = vld.sshfl [vmem:[#allocation1 + $0x10] sm:$0xff pattern:$0x73625140]  ;;  %vm3219_vm13 = vcmask 1041408  }
  0xcb   :  { %v484_v58 = vsel %vm350_vm14, 1, %v3043_v27  ;;  %vm338_vm8 = vmand %vm3216_vm10, %vm3215_vm9  ;;  %v501_v13 = vsel %vm494_vm0, %v478_v33, -inf  ;;  %vm3220_vm6 = vcmask 1045508   ;;  %608 = vrot.lane.b32.xlu2 %v592_v31, %s1281_s22  ;;  %v591_v4 = vld.sshfl [vmem:[#allocation1 + $0x8] sm:$0xff pattern:$0x73625140] }
  0xcc   :  { %vm345_vm5 = vmand %vm3218_vm7, %vm3217_vm12  ;;  %v491_v28 = vperm.slane %v484_v58, 0  ;;  %v520_v39 = vsel %vm3219_vm13, %v501_v13, %v515_v42  ;;  %v521_v29 = vsel %vm3220_vm6, %v516_v0, %v517_v52  ;;  %vm499_vm14 = vcmp.eq.s32.totalorder %v492_v55, 1  ;;  %606 = vrot.lane.b32.xlu1 %v591_v4, %s1281_s22  ;;  %v590_v37 = vld.sshfl [vmem:[#allocation1] sm:$0xff pattern:$0x73625140] }
  0xcd   :  { %vm352_vm4 = vmor %vm338_vm8, %vm345_vm5  ;;  %vm3221_vm3 = vcmask 1043456   ;;  %vm3222_vm0 = vcmp.lt.s32.totalorder %v1313_v2, 127  ;;  %604 = vrot.lane.b32.xlu0 %v590_v37, %s1281_s22  ;;  %v595_v0 = vld.sshfl [vmem:[#allocation1 + $0x28] sm:$0xff pattern:$0x73625140]  ;;  %vm3027_vm6 = vcmp.ge.f32.partialorder %v1366_v51, 2.0  ;;  %vm3242_vm7 = vnez %v3102_v9 }
  0xce   :  { %v486_v36 = vsel %vm352_vm4, 1, %v3043_v27  ;;  %v522_v40 = vsel %vm3221_vm3, %v520_v39, %v521_v29  ;;  %v474_v44 = vsel %vm3222_vm0, %v1794_v63, %v469_v12  ;;  %vm3223_vm9 = vmmov %vm3222_vm0  ;;  %vm498_vm5 = vcmp.eq.s32.totalorder %v491_v28, 1  ;;  %v593_v63 = vld.sshfl [vmem:[#allocation1 + $0x18] sm:$0xff pattern:$0x73625140] }
  0xcf   :  { %v493_v26 = vperm.slane %v486_v36, 0  ;;  %v473_v53 = vsel %vm3223_vm9, %v469_v12, %v471_v3  ;;  %vm3224_vm8 = vmmov %vm3222_vm0  ;;  %v1933_v45 = vmax.f32 %v1334_v17, %v522_v40  ;;  %v505_v42 = vsel %vm498_vm5, %v474_v44, -inf  ;;  %v594_v52 = vld.sshfl [vmem:[#allocation1 + $0x20] sm:$0xff pattern:$0x73625140] }
  0xd0   :  { %v479_v48 = vsel %vm3224_vm8, %v471_v3, %v459_v34  ;;  %v506_v47 = vsel %vm499_vm14, %v473_v53, -inf  ;;  %vm3225_vm4 = vmmov %vm3219_vm13  ;;  %v596_v12 = vld.sshfl [vmem:[#allocation1 + $0x30] sm:$0xff pattern:$0x73625140]  ;;  %vm3028_vm14 = vcmp.le.f32.partialorder %v1366_v51, 4.0  ;;  %vm3032_vm9 = vcmp.ge.f32.partialorder %v1407_v6, 2.0 }
  0xd1   :  { %vm500_vm12 = vcmp.eq.s32.totalorder %v493_v26, 1  ;;  %v518_v55 = vrot.slane %v506_v47, 6  ;;  %677 = vst [vmem:[#allocation1] ss:$4 sm:$0xff] %v1933_v45  ;;  %vm3226_vm13 = vmmov %vm3221_vm3  ;;  %vm3031_vm3 = vcmp.ge.f32.partialorder %v1393_v1, 2.0  ;;  %v3229_v3 = vmov 0 }
  0xd2   :  { %v507_v33 = vsel %vm500_vm12, %v479_v48, -inf  ;;  %vm1954_vm0 = vmand %vm3189_vm2, %vm3027_vm6  ;;  %v3232_v40 = vmov 0  ;;  %vm3234_vm6 = vnez %v3090_v46  ;;  %vm3237_vm5 = vcmp.le.f32.partialorder %v1407_v6, 4.0 }
  0xd3   :  { %v519_v56 = vrot.slane %v507_v33, 4  ;;  %v523_v58 = vsel %vm3225_vm4, %v505_v42, %v518_v55  ;;  %614 = vrot.lane.b32.xlu2 %v595_v0, %s1281_s22  ;;  %vm1963_vm8 = vmand %vm3200_vm15, %vm3028_vm14  ;;  %vm3231_vm4 = vnez %v3094_v59  ;;  %vm3238_vm15 = vnez %v3092_v54 }
  0xd4   :  { %612 = vrot.lane.b32.xlu1 %v594_v52, %s1281_s22  ;;  %v3230_v3 = vsel %vm1963_vm8, 4294967295, %v3229_v3  ;;  %vm1981_vm14 = vmand %vm3234_vm6, %vm3032_vm9  ;;  %v3243_v53 = vmov 0  ;;  %vm3245_vm10 = vcmp.ge.f32.partialorder %v1411_v10, 2.0  ;;  %vm3040_vm6 = vcmp.ge.f32.partialorder %v1430_v8, 2.0 }
  0xd5   :  { %v524_v61 = vsel %vm3226_vm13, %v523_v58, %v519_v56  ;;  %610 = vrot.lane.b32.xlu0 %v593_v63, %s1281_s22  ;;  %vm1973_vm13 = vmand %vm3231_vm4, %vm3031_vm3  ;;  %vm3033_vm3 = vcmp.le.f32.partialorder %v1411_v10, 4.0  ;;  %vm3241_vm4 = vcmp.le.f32.partialorder %v1393_v1, 4.0 }
  0xd6   :  { %v1940_v34 = vmax.f32 %v1336_v18, %v524_v61  ;;  %v3233_v40 = vsel %vm1973_vm13, 4294967295, %v3232_v40  ;;  %vm1990_vm2 = vmand %vm3238_vm15, %vm3237_vm5  ;;  %vm3246_vm5 = vnez %v3104_v16  ;;  %vm3258_vm13 = vnez %v3120_v35 }
  0xd7   :  { %vm1999_vm9 = vmand %vm3242_vm7, %vm3241_vm4  ;;  %vm3251_vm4 = vcmp.ge.f32.partialorder %v1364_v50, 2.0  ;;  %vm3255_vm7 = vnez %v3117_v32 }
  0xd8   :  { %679 = vst [vmem:[#allocation1 + $0x20] ss:$4 sm:$0xff] %v1940_v34  ;;  %v682_v13 = vld.sshfl [vmem:[#allocation1 + $0x10] sm:$0xff pattern:$0x73625140]  ;;  %v3244_v53 = vsel %vm1999_vm9, 4294967295, %v3243_v53  ;;  %vm2009_vm15 = vmand %vm3246_vm5, %vm3245_vm10 }
  0xd9   :  { %v681_v28 = vld.sshfl [vmem:[#allocation1 + $0x8] sm:$0xff pattern:$0x73625140]  ;;  %v683_v39 = vld.sshfl [vmem:[#allocation1 + $0x18] sm:$0xff pattern:$0x73625140]  ;;  %vm2021_vm12 = vmand %vm3202_vm1, %vm3033_vm3 }
  0xda   :  { %v680_v29 = vld.sshfl [vmem:[#allocation1] sm:$0xff pattern:$0x73625140]  ;;  %vm2037_vm5 = vmand %vm3210_vm11, %vm3251_vm4  ;;  %vm3039_vm3 = vcmp.ge.f32.partialorder %v1354_v43, 2.0  ;;  %vm3254_vm1 = vcmp.le.f32.partialorder %v1364_v50, 4.0  ;;  %vm3041_vm11 = vcmp.le.f32.partialorder %v1354_v43, 4.0 }
  0xdb   :  { %698 = vrot.lane.b32.xlu2 %v682_v13, %s1282_s23  ;;  %vm2046_vm10 = vmand %vm3255_vm7, %vm3254_vm1  ;;  %vm3042_vm9 = vcmp.le.f32.partialorder %v1430_v8, 4.0  ;;  %vm3261_vm1 = vnez %v3140_v49 }
  0xdc   :  { %696 = vrot.lane.b32.xlu1 %v681_v28, %s1282_s23  ;;  %vm560_vm4 = vmor %vm2009_vm15, %vm2021_vm12  ;;  %vm3264_vm15 = vnez %v3125_v38 }
  0xdd   :  { %616 = vrot.lane.b32.xlu0 %v596_v12, %s1281_s22  ;;  %vm2061_vm8 = vmand %vm3258_vm13, %vm3039_vm3  ;;  %vm3267_vm3 = vnez %v3150_v57  ;;  %v629_v12 = vsel %vm560_vm4, 1, %v3043_v27  ;;  %vm3272_vm4 = vnez %v3094_v59 }
  0xde   :  { %vm2069_vm7 = vmand %vm3261_vm1, %vm3040_vm6  ;;  %vm3271_vm6 = vcmp.le.f32.partialorder %v1393_v1, 4.0 }
  0xdf   :  { %v685_v31 = vld.sshfl [vmem:[#allocation1 + $0x28] sm:$0xff pattern:$0x73625140]  ;;  %v684_v36 = vld.sshfl [vmem:[#allocation1 + $0x20] sm:$0xff pattern:$0x73625140]  ;;  %vm2079_vm12 = vmand %vm3264_vm15, %vm3041_vm11 }
  0xe0   :  { %v686_v4 = vld.sshfl [vmem:[#allocation1 + $0x30] sm:$0xff pattern:$0x73625140]  ;;  %vm2087_vm13 = vmand %vm3267_vm3, %vm3042_vm9 }
  0xe1   :  { %vm557_vm11 = vmor %vm2061_vm8, %vm2079_vm12 }
  0xe2   :  { %vm563_vm9 = vmor %vm2069_vm7, %vm2087_vm13  ;;  %vm3275_vm7 = vnez %v3230_v3  ;;  %vm3277_vm13 = vnez %v3233_v40  ;;  %v626_v44 = vsel %vm557_vm11, 1, %v3043_v27  ;;  %vm3293_vm11 = vnez %v3104_v16 }
  0xe3   :  { %704 = vrot.lane.b32.xlu2 %v685_v31, %s1282_s23  ;;  %vm3270_vm3 = vmor %vm1981_vm14, %vm1990_vm2  ;;  %vm3278_vm2 = vnez %v3244_v53  ;;  %v632_v37 = vsel %vm563_vm9, 1, %v3043_v27  ;;  %v633_v55 = vperm.slane %v626_v44, 0 }
  0xe4   :  { %702 = vrot.lane.b32.xlu1 %v684_v36, %s1282_s23  ;;  %v631_v13 = vsel %vm3270_vm3, 1, %v3043_v27  ;;  %vm2114_vm15 = vmand %vm3272_vm4, %vm3271_vm6  ;;  %vm3280_vm6 = vcmp.ge.f32.partialorder %v1393_v1, 2.0  ;;  %vm3281_vm3 = vnez %v3102_v9 }
  0xe5   :  { %700 = vrot.lane.b32.xlu0 %v683_v39, %s1282_s23  ;;  %vm3276_vm8 = vmor %vm1954_vm0, %vm3275_vm7  ;;  %v636_v39 = vperm.slane %v629_v12, 0  ;;  %vm3284_vm0 = vcmp.le.f32.partialorder %v1366_v51, 4.0  ;;  %vm3285_vm7 = vnez %v3096_v60  ;;  %v638_v3 = vperm.slane %v631_v13, 0 }
  0xe6   :  { %v628_v31 = vsel %vm3276_vm8, 1, %v3043_v27  ;;  %vm3279_vm14 = vmor %vm3277_vm13, %vm3278_vm2  ;;  %vm3046_vm13 = vcmp.lt.s32.totalorder %v1313_v2, 2  ;;  %vm3288_vm2 = vcmp.ge.f32.partialorder %v1366_v51, 2.0 }
  0xe7   :  { %v627_v36 = vsel %vm3279_vm14, 1, %v3043_v27  ;;  %vm2134_vm12 = vmand %vm3281_vm3, %vm3280_vm6  ;;  %vm3289_vm14 = vnez %v3106_v23  ;;  %v635_v47 = vperm.slane %v628_v31, 0 }
  0xe8   :  { %vm2142_vm8 = vmand %vm3285_vm7, %vm3284_vm0  ;;  %v634_v63 = vperm.slane %v627_v36, 0  ;;  %vm3292_vm0 = vcmp.le.f32.partialorder %v1411_v10, 4.0 }
  0xe9   :  { %vm2153_vm6 = vmand %vm3289_vm14, %vm3288_vm2  ;;  %vm2175_vm2 = vcmp.eq.s32.totalorder %v636_v39, 1  ;;  %vm3299_vm14 = vcmp.ge.f32.partialorder %v1411_v10, 2.0  ;;  %v639_v39 = vperm.slane %v632_v37, 0 }
  0xea   :  { %vm2163_vm3 = vmand %vm3293_vm11, %vm3292_vm0  ;;  %vm3300_vm0 = vnez %v3110_v25 }
  0xeb   :  { %vm3296_vm9 = vmor %vm2037_vm5, %vm2046_vm10  ;;  %vm2196_vm10 = vcmp.eq.s32.totalorder %v638_v3, 1  ;;  %vm3309_vm5 = vcmp.le.f32.partialorder %v1364_v50, 4.0 }
  0xec   :  { %694 = vrot.lane.b32.xlu1 %v680_v29, %s1282_s23  ;;  %v630_v12 = vsel %vm3296_vm9, 1, %v3043_v27  ;;  %vm2183_vm7 = vmand %vm3300_vm0, %vm3299_vm14  ;;  %vm2206_vm9 = vcmp.eq.s32.totalorder %v635_v47, 1  ;;  %vm3310_vm14 = vnez %v3108_v24  ;;  %vm3314_vm0 = vnez %v3117_v32 }
  0xed   :  { %706 = vrot.lane.b32.xlu0 %v686_v4, %s1282_s23  ;;  %v637_v47 = vperm.slane %v630_v12, 0  ;;  %vm2228_vm4 = vmand %vm3310_vm14, %vm3309_vm5  ;;  %v3315_v27 = vmov 0  ;;  %vm2248_vm5 = vcmp.eq.s32.totalorder %v633_v55, 1  ;;  %vm2252_vm14 = vcmp.eq.s32.totalorder %v639_v39, 1 }
 0x125   :  { %v609_v42 = vpop.permute.xlu2 %608 }
 0x12d   :  { %v615_v48 = vpop.permute.xlu2 %614 }
 0x13e   :  { %v607_v56 = vpop.permute.xlu1 %606 }
 0x13f   :  { %v2073_v61 = vpop.permute.xlu0 %604  ;;  %v623_v36 = vsel %vm3046_vm13, %v607_v56, %v609_v42 }
 0x140   :  { %v624_v33 = vsel %vm3046_vm13, %v2073_v61, %v607_v56  ;;  %v649_v44 = vsel %vm2206_vm9, %v623_v36, -inf  ;;  %vm3317_vm9 = vcmp.le.f32.partialorder %v1407_v6, 4.0  ;;  %v3330_v56 = vmov 0  }
 0x141   :  { %v662_v26 = vrot.slane %v649_v44, 4 }
 0x146   :  { %v613_v4 = vpop.permute.xlu1 %612 }
 0x147   :  { %v611_v40 = vpop.permute.xlu0 %610  ;;  %v620_v52 = vsel %vm3046_vm13, %v613_v4, %v615_v48 }
 0x148   :  { %v622_v58 = vsel %vm3046_vm13, %v609_v42, %v611_v40  ;;  %vm2210_vm13 = vcmp.eq.s32.totalorder %v634_v63, 1  ;;  %v652_v3 = vsel %vm2196_vm10, %v620_v52, -inf  ;;  %v3311_v63 = vmov 0 }
 0x149   :  { %v650_v11 = vsel %vm2175_vm2, %v622_v58, -inf  ;;  %v648_v37 = vsel %vm2210_vm13, %v624_v33, -inf  ;;  %v3312_v63 = vsel %vm2228_vm4, 4294967295, %v3311_v63  ;;  %vm3313_vm10 = vcmp.ge.f32.partialorder %v1364_v50, 2.0 }
 0x14a   :  { %vm2236_vm2 = vmand %vm3314_vm0, %vm3313_vm10  ;;  %vm3318_vm13 = vnez %v3090_v46  ;;  %v663_v52 = vrot.slane %v650_v11, 2  ;;  %vm3325_vm10 = vcmp.ge.f32.partialorder %v1407_v6, 2.0  ;;  %vm3326_vm0 = vnez %v3092_v54 }
 0x14b   :  { %v3316_v27 = vsel %vm2236_vm2, 4294967295, %v3315_v27  ;;  %vm2244_vm11 = vmand %vm3318_vm13, %vm3317_vm9  ;;  %v664_v42 = vrot.slane %v652_v3, 6  ;;  %vm3329_vm9 = vcmp.lt.s32.totalorder %v1313_v2, 2  ;;  %vm3334_vm2 = vnez %v3120_v35 }
 0x14c   :  { %vm2262_vm4 = vmand %vm3326_vm0, %vm3325_vm10  ;;  %v621_v11 = vsel %vm3329_vm9, %v611_v40, %v613_v4  ;;  %vm3333_vm0 = vcmp.le.f32.partialorder %v1354_v43, 4.0  ;;  %v661_v40 = vrot.slane %v648_v37, 6 }
 0x14d   :  { %vm3331_vm13 = vmor %vm2142_vm8, %vm2153_vm6  ;;  %vm3337_vm8 = vcmp.lt.s32.totalorder %v1313_v2, 2 }
 0x14e   :  { %v2256_v36 = vpop.permute.xlu1 %696  ;;  %v718_v39 = vsel %vm3331_vm13, 1, %v3330_v56  ;;  %vm3332_vm10 = vmor %vm2163_vm3, %vm2183_vm7  ;;  %vm3339_vm3 = vcmp.le.f32.partialorder %v1430_v8, 4.0  ;;  %vm3342_vm13 = vcmp.ge.f32.partialorder %v1354_v43, 2.0 }
 0x14f   :  { %v617_v55 = vpop.permute.xlu0 %616  ;;  %v719_v62 = vsel %vm3332_vm10, 1, %v3330_v56  ;;  %vm2284_vm9 = vmand %vm3334_vm2, %vm3333_vm0  ;;  %vm644_vm0 = vcmp.eq.s32.totalorder %v637_v47, 1  ;;  %vm3343_vm10 = vnez %v3125_v38 }
 0x150   :  { %v619_v53 = vsel %vm3337_vm8, %v615_v48, %v617_v55  ;;  %vm3338_vm6 = vmmov %vm3337_vm8  ;;  %v651_v48 = vsel %vm644_vm0, %v621_v11, -inf  ;;  %v726_v7 = vperm.slane %v719_v62, 0  ;;  %v699_v62 = vpop.permute.xlu2 %698 }
 0x151   :  { %v625_v0 = vsel %vm3338_vm6, %v617_v55, %v2073_v61  ;;  %vm2297_vm7 = vmand %vm3261_vm1, %vm3339_vm3  ;;  %v653_v44 = vsel %vm2252_vm14, %v619_v53, -inf  ;;  %vm3346_vm6 = vcmask 1045508   ;;  %vm3347_vm3 = vcmask 1041408  }
 0x152   :  { %v647_v3 = vsel %vm2248_vm5, %v625_v0, -inf  ;;  %vm2309_vm8 = vmand %vm3343_vm10, %vm3342_vm13  ;;  %v667_v37 = vsel %vm3346_vm6, %v662_v26, %v663_v52  ;;  %v665_v55 = vrot.slane %v653_v44, 4  ;;  %vm3348_vm1 = vcmp.ge.f32.partialorder %v1430_v8, 2.0 }
 0x153   :  { %v666_v47 = vsel %vm3347_vm3, %v647_v3, %v661_v40  ;;  %vm3349_vm5 = vnez %v3150_v57  ;;  %vm3352_vm14 = vmmov %vm3347_vm3  ;;  %vm3353_vm13 = vcmask 1043456   ;;  %v725_v0 = vperm.slane %v718_v39, 0 }
 0x154   :  { %vm2319_vm2 = vmand %vm3349_vm5, %vm3348_vm1  ;;  %v669_v13 = vsel %vm3352_vm14, %v651_v48, %v664_v42  ;;  %v668_v53 = vsel %vm3353_vm13, %v666_v47, %v667_v37 }
 0x155   :  { %vm583_vm0 = vmor %vm2244_vm11, %vm2262_vm4  ;;  %v2331_v11 = vmax.f32 %v1855_v30, %v668_v53 }
 0x156   :  { %vm3354_vm6 = vmmov %vm3353_vm13  ;;  %vm708_vm13 = vcmp.lt.s32.totalorder %v1313_v2, 126  ;;  %v703_v30 = vpop.permute.xlu1 %702  ;;  %v721_v40 = vsel %vm583_vm0, 1, %v3330_v56  ;;  %vm3366_vm0 = vcmask 1045508  }
 0x157   :  { %v670_v52 = vsel %vm3354_vm6, %v669_v13, %v665_v55  ;;  %vm3355_vm1 = vmor %vm2114_vm15, %vm2134_vm12  ;;  %823 = vst [vmem:[#allocation1] ss:$4 sm:$0xff] %v2331_v11  ;;  %vm2353_vm15 = vcmp.eq.s32.totalorder %v725_v0, 1  ;;  %v701_v26 = vpop.permute.xlu0 %700  ;;  %vm2357_vm12 = vcmp.eq.s32.totalorder %v726_v7, 1  ;;  %v713_v3 = vsel %vm708_vm13, %v2256_v36, %v699_v62 }
 0x158   :  { %v717_v42 = vsel %vm3355_vm1, 1, %v3330_v56  ;;  %vm578_vm3 = vmor %vm2284_vm9, %vm2309_vm8  ;;  %v2344_v39 = vmax.f32 %v1874_v41, %v670_v52  ;;  %v712_v31 = vsel %vm708_vm13, %v699_v62, %v701_v26  ;;  %v711_v7 = vsel %vm708_vm13, %v701_v26, %v703_v30 }
 0x159   :  { %vm584_vm14 = vmor %vm2297_vm7, %vm2319_vm2  ;;  %v724_v28 = vperm.slane %v717_v42, 0  ;;  %vm3360_vm2 = vnez %v3316_v27  ;;  %vm3361_vm7 = vnez %v3312_v63  ;;  %v716_v58 = vsel %vm578_vm3, 1, %v3330_v56 }
 0x15a   :  { %825 = vst [vmem:[#allocation1 + $0x20] ss:$4 sm:$0xff] %v2344_v39  ;;  %vm582_vm6 = vmor %vm3361_vm7, %vm3360_vm2  ;;  %v722_v33 = vsel %vm584_vm14, 1, %v3330_v56  ;;  %v739_v63 = vsel %vm2353_vm15, %v712_v31, -inf  ;;  %v740_v27 = vsel %vm2357_vm12, %v711_v7, -inf  ;;  %v728_v44 = vperm.slane %v721_v40, 0 }
 0x15b   :  { %vm2389_vm4 = vcmp.eq.s32.totalorder %v724_v28, 1  ;;  %v720_v4 = vsel %vm582_vm6, 1, %v3330_v56  ;;  %v723_v61 = vperm.slane %v716_v58, 0  ;;  %v729_v37 = vperm.slane %v722_v33, 0  ;;  %v705_v28 = vpop.permute.xlu2 %704 }
 0x15c   :  { %v738_v55 = vsel %vm2389_vm4, %v713_v3, -inf  ;;  %v752_v47 = vrot.slane %v739_v63, 4  ;;  %v753_v12 = vrot.slane %v740_v27, 2  ;;  %v727_v0 = vperm.slane %v720_v4, 0 }
 0x15d   :  { %vm2398_vm11 = vcmp.eq.s32.totalorder %v728_v44, 1  ;;  %v751_v29 = vrot.slane %v738_v55, 6  ;;  %vm730_vm9 = vcmp.eq.s32.totalorder %v723_v61, 1  ;;  %vm736_vm8 = vcmp.eq.s32.totalorder %v729_v37, 1 }
 0x15e   :  { %v828_v13 = vld.sshfl [vmem:[#allocation1 + $0x10] sm:$0xff pattern:$0x73625140]  ;;  %v827_v53 = vld.sshfl [vmem:[#allocation1 + $0x8] sm:$0xff pattern:$0x73625140]  ;;  %v695_v62 = vpop.permute.xlu1 %694  ;;  %v710_v40 = vsel %vm708_vm13, %v703_v30, %v705_v28  ;;  %v757_v33 = vsel %vm3366_vm0, %v752_v47, %v753_v12 }
 0x15f   :  { %844 = vrot.lane.b32.xlu1 %v828_v13, %s1283_s24  ;;  %842 = vrot.lane.b32.xlu0 %v827_v53, %s1283_s24  ;;  %v826_v52 = vld.sshfl [vmem:[#allocation1] sm:$0xff pattern:$0x73625140]  ;;  %v707_v26 = vpop.permute.xlu0 %706  ;;  %v714_v41 = vsel %vm708_vm13, %v695_v62, %v2256_v36  ;;  %vm3367_vm1 = vcmask 1041408   ;;  %vm734_vm3 = vcmp.eq.s32.totalorder %v727_v0, 1  ;;  %vm3368_vm14 = vcmask 1043456  }
 0x160   :  { %840 = vrot.lane.b32.xlu2 %v826_v52, %s1283_s24  ;;  %v709_v31 = vsel %vm708_vm13, %v705_v28, %v707_v26  ;;  %v715_v7 = vsel %vm708_vm13, %v707_v26, %v695_v62  ;;  %v737_v58 = vsel %vm730_vm9, %v714_v41, -inf  ;;  %v741_v48 = vsel %vm734_vm3, %v710_v40, -inf  ;;  %vm3369_vm15 = vmmov %vm3367_vm1  ;;  %v829_v55 = vld.sshfl [vmem:[#allocation1 + $0x18] sm:$0xff pattern:$0x73625140] }
 0x161   :  { %v742_v3 = vsel %vm2398_vm11, %v709_v31, -inf  ;;  %v743_v63 = vsel %vm736_vm8, %v715_v7, -inf  ;;  %v756_v27 = vsel %vm3367_vm1, %v737_v58, %v751_v29  ;;  %v831_v37 = vld.sshfl [vmem:[#allocation1 + $0x28] sm:$0xff pattern:$0x73625140]  ;;  %vm3370_vm13 = vmmov %vm3368_vm14  ;;  %vm3049_vm12 = vcmp.ge.f32.partialorder %v1411_v10, 4.0 }
 0x162   :  { %v754_v36 = vrot.slane %v742_v3, 6  ;;  %v755_v44 = vrot.slane %v743_v63, 4  ;;  %v758_v30 = vsel %vm3368_vm14, %v756_v27, %v757_v33  ;;  %v830_v12 = vld.sshfl [vmem:[#allocation1 + $0x20] sm:$0xff pattern:$0x73625140]  ;;  %vm3050_vm2 = vcmp.le.f32.partialorder %v1411_v10, 2.0 }
 0x163   :  { %v2418_v4 = vmax.f32 %v1933_v45, %v758_v30  ;;  %v832_v45 = vld.sshfl [vmem:[#allocation1 + $0x30] sm:$0xff pattern:$0x73625140]  ;;  %vm3051_vm7 = vcmp.ge.f32.partialorder %v1393_v1, 4.0  ;;  %vm3052_vm6 = vcmp.ge.f32.partialorder %v1366_v51, 4.0  ;;  %vm3054_vm4 = vcmp.le.f32.partialorder %v1393_v1, 2.0 }
 0x164   :  { %v759_v61 = vsel %vm3369_vm15, %v741_v48, %v754_v36  ;;  %vm3056_vm11 = vcmp.le.f32.partialorder %v1366_v51, 2.0  ;;  %vm3371_vm8 = vnez %v3104_v16  ;;  %v3372_v26 = vmov 0 }
 0x165   :  { %v760_v47 = vsel %vm3370_vm13, %v759_v61, %v755_v44  ;;  %913 = vst [vmem:[#allocation1] ss:$4 sm:$0xff] %v2418_v4  ;;  %vm2445_vm0 = vmand %vm3371_vm8, %vm3049_vm12  ;;  %vm3374_vm1 = vnez %v3110_v25  ;;  %v3375_v41 = vmov 0  ;;  %vm3377_vm15 = vnez %v3094_v59 }
 0x166   :  { %v2424_v13 = vmax.f32 %v1940_v34, %v760_v47  ;;  %v3373_v26 = vsel %vm2445_vm0, 4294967295, %v3372_v26  ;;  %vm2453_vm3 = vmand %vm3374_vm1, %vm3050_vm2  ;;  %v3378_v40 = vmov 0  ;;  %vm3380_vm12 = vnez %v3096_v60 }
 0x167   :  { %850 = vrot.lane.b32.xlu1 %v831_v37, %s1283_s24  ;;  %848 = vrot.lane.b32.xlu0 %v830_v12, %s1283_s24  ;;  %v3376_v41 = vsel %vm2453_vm3, 4294967295, %v3375_v41  ;;  %vm2462_vm13 = vmand %vm3377_vm15, %vm3051_vm7  ;;  %v3381_v31 = vmov 0  ;;  %vm3383_vm2 = vnez %v3102_v9  ;;  %v3384_v7 = vmov 0 }
 0x168   :  { %846 = vrot.lane.b32.xlu2 %v829_v55, %s1283_s24  ;;  %915 = vst [vmem:[#allocation1 + $0x20] ss:$4 sm:$0xff] %v2424_v13  ;;  %v3379_v40 = vsel %vm2462_vm13, 4294967295, %v3378_v40  ;;  %vm2470_vm9 = vmand %vm3380_vm12, %vm3052_vm6  ;;  %vm3386_vm7 = vnez %v3106_v23  ;;  %v3387_v58 = vmov 0  ;;  %v3391_v3 = vmov 0 }
 0x169   :  { %v3382_v31 = vsel %vm2470_vm9, 4294967295, %v3381_v31  ;;  %vm2478_vm14 = vmand %vm3383_vm2, %vm3054_vm4  ;;  %vm3389_vm9 = vcmp.ge.f32.partialorder %v1364_v50, 4.0  ;;  %vm3390_vm4 = vnez %v3108_v24  ;;  %vm3393_vm13 = vcmp.ge.f32.partialorder %v1407_v6, 4.0 }
 0x16a   :  { %v3385_v7 = vsel %vm2478_vm14, 4294967295, %v3384_v7  ;;  %vm2486_vm15 = vmand %vm3386_vm7, %vm3056_vm11  ;;  %vm3394_vm11 = vnez %v3090_v46  ;;  %v3395_v63 = vmov 0  ;;  %vm3397_vm12 = vcmp.le.f32.partialorder %v1364_v50, 2.0 }
 0x16b   :  { %v3388_v58 = vsel %vm2486_vm15, 4294967295, %v3387_v58  ;;  %vm2498_vm2 = vmand %vm3390_vm4, %vm3389_vm9  ;;  %vm3398_vm15 = vnez %v3117_v32  ;;  %v3399_v27 = vmov 0  ;;  %vm3062_vm9 = vcmp.ge.f32.partialorder %v1430_v8, 4.0 }
 0x16c   :  { %v919_v53 = vld.sshfl [vmem:[#allocation1 + $0x18] sm:$0xff pattern:$0x73625140]  ;;  %v918_v0 = vld.sshfl [vmem:[#allocation1 + $0x10] sm:$0xff pattern:$0x73625140]  ;;  %vm2506_vm7 = vmand %vm3394_vm11, %vm3393_vm13 }
 0x16d   :  { %v917_v52 = vld.sshfl [vmem:[#allocation1 + $0x8] sm:$0xff pattern:$0x73625140]  ;;  %v916_v28 = vld.sshfl [vmem:[#allocation1] sm:$0xff pattern:$0x73625140]  ;;  %vm2515_vm14 = vmand %vm3398_vm15, %vm3397_vm12  ;;  %vm3406_vm12 = vnez %v3120_v35 }
 0x16e   :  { %v3392_v3 = vsel %vm2498_vm2, 4294967295, %v3391_v3  ;;  %v3396_v63 = vsel %vm2506_vm7, 4294967295, %v3395_v63  ;;  %v3400_v27 = vsel %vm2515_vm14, 4294967295, %v3399_v27  ;;  %vm3401_vm4 = vcmp.le.f32.partialorder %v1407_v6, 2.0 }
 0x16f   :  { %936 = vrot.lane.b32.xlu1 %v919_v53, %s1284_s25  ;;  %934 = vrot.lane.b32.xlu0 %v918_v0, %s1284_s25  ;;  %v922_v42 = vld.sshfl [vmem:[#allocation1 + $0x30] sm:$0xff pattern:$0x73625140]  ;;  %v921_v34 = vld.sshfl [vmem:[#allocation1 + $0x28] sm:$0xff pattern:$0x73625140]  ;;  %vm3402_vm2 = vnez %v3092_v54  ;;  %vm3409_vm14 = vnez %v3140_v49 }
 0x170   :  { %932 = vrot.lane.b32.xlu2 %v917_v52, %s1284_s25  ;;  %1065 = vst [vmem:[#allocation1 + $0x30] ss:$2 sm:$0xff] %v3330_v56  ;;  %v920_v62 = vld.sshfl [vmem:[#allocation1 + $0x20] sm:$0xff pattern:$0x73625140]  ;;  %vm2524_vm13 = vmand %vm3402_vm2, %vm3401_vm4  ;;  %vm3063_vm6 = vcmp.le.f32.partialorder %v1354_v43, 2.0 }
 0x171   :  { %vm3405_vm7 = vcmp.ge.f32.partialorder %v1354_v43, 4.0  ;;  %v3407_v44 = vmov 0  ;;  %vm2542_vm4 = vmand %vm3409_vm14, %vm3062_vm9  ;;  %v3410_v30 = vmov 0  ;;  %v3412_v48 = vmov 0 }
 0x172   :  { %vm2534_vm15 = vmand %vm3406_vm12, %vm3405_vm7  ;;  %v3411_v30 = vsel %vm2542_vm4, 4294967295, %v3410_v30  ;;  %vm3414_vm7 = vcmp.le.f32.partialorder %v1430_v8, 2.0  ;;  %v3415_v61 = vmov 0  ;;  %vm3417_vm9 = vcmp.le.f32.partialorder %v1411_v10, 2.0 }
 0x173   :  { %v3408_v44 = vsel %vm2534_vm15, 4294967295, %v3407_v44  ;;  %vm2550_vm11 = vmand %vm3343_vm10, %vm3063_vm6  ;;  %v3418_v37 = vmov 0  ;;  %v3421_v12 = vmov 0  ;;  %vm3432_vm0 = vcmp.le.f32.partialorder %v1393_v1, 2.0 }
 0x174   :  { %v3413_v48 = vsel %vm2550_vm11, 4294967295, %v3412_v48  ;;  %vm2558_vm12 = vmand %vm3349_vm5, %vm3414_vm7  ;;  %vm3420_vm7 = vcmp.ge.f32.partialorder %v1411_v10, 4.0  ;;  %v3434_v10 = vmov 0  ;;  %vm3436_vm10 = vcmp.ge.f32.partialorder %v1393_v1, 4.0 }
 0x175   :  { %v3416_v61 = vsel %vm2558_vm12, 4294967295, %v3415_v61  ;;  %vm2566_vm14 = vmand %vm3371_vm8, %vm3417_vm9  ;;  %vm3423_vm8 = vnez %v3385_v7  ;;  %vm3424_vm9 = vnez %v3379_v40  ;;  %vm3437_vm11 = vnez %v3102_v9 }
 0x176   :  { %v3419_v37 = vsel %vm2566_vm14, 4294967295, %v3418_v37  ;;  %vm2582_vm5 = vmand %vm3374_vm1, %vm3420_vm7  ;;  %vm3429_vm7 = vnez %v3396_v63  ;;  %vm3433_vm14 = vnez %v3094_v59  ;;  %v3438_v25 = vmov 0 }
 0x177   :  { %942 = vrot.lane.b32.xlu1 %v922_v42, %s1284_s25  ;;  %940 = vrot.lane.b32.xlu0 %v921_v34, %s1284_s25  ;;  %v3422_v12 = vsel %vm2582_vm5, 4294967295, %v3421_v12  ;;  %vm2620_vm5 = vmand %vm3433_vm14, %vm3432_vm0  ;;  %vm3440_vm3 = vcmp.le.f32.partialorder %v1366_v51, 2.0  ;;  %vm3441_vm1 = vnez %v3096_v60  ;;  %vm3444_vm0 = vcmp.ge.f32.partialorder %v1366_v51, 4.0 }
 0x178   :  { %938 = vrot.lane.b32.xlu2 %v920_v62, %s1284_s25  ;;  %v3435_v10 = vsel %vm2620_vm5, 4294967295, %v3434_v10  ;;  %vm2628_vm15 = vmand %vm3437_vm11, %vm3436_vm10  ;;  %vm3445_vm14 = vnez %v3106_v23  ;;  %vm3448_vm11 = vcmp.le.f32.partialorder %v1364_v50, 2.0  ;;  %v3454_v60 = vmov 0 }
 0x179   :  { %v3439_v25 = vsel %vm2628_vm15, 4294967295, %v3438_v25  ;;  %vm2636_vm6 = vmand %vm3441_vm1, %vm3440_vm3  ;;  %vm3449_vm3 = vnez %v3108_v24  ;;  %vm3456_vm10 = vcmp.ge.f32.partialorder %v1364_v50, 4.0  ;;  %vm3457_vm15 = vnez %v3117_v32 }
 0x17a   :  { %vm2644_vm2 = vmand %vm3445_vm14, %vm3444_vm0  ;;  %vm3452_vm0 = vcmp.le.f32.partialorder %v1407_v6, 2.0  ;;  %vm3453_vm14 = vnez %v3090_v46  ;;  %v3465_v50 = vmov 0 }
 0x17b   :  { %vm2658_vm1 = vmand %vm3449_vm3, %vm3448_vm11  ;;  %vm3460_vm11 = vnez %v3373_v26  ;;  %vm3461_vm3 = vnez %v3376_v41 }
 0x17c   :  { %vm2666_vm12 = vmand %vm3453_vm14, %vm3452_vm0  ;;  %vm3463_vm0 = vcmp.ge.f32.partialorder %v1407_v6, 4.0  ;;  %vm3464_vm14 = vnez %v3092_v54 }
 0x17d   :  { %v3455_v60 = vsel %vm2666_vm12, 4294967295, %v3454_v60  ;;  %vm2674_vm5 = vmand %vm3457_vm15, %vm3456_vm10  ;;  %vm3469_vm10 = vnez %v3388_v58 }
 0x17e   :  { %vm3462_vm4 = vmor %vm3460_vm11, %vm3461_vm3 }
 0x17f   :  { %930 = vrot.lane.b32.xlu0 %v916_v28, %s1284_s25  ;;  %v865_v24 = vsel %vm3462_vm4, 1, %v3330_v56  ;;  %vm2690_vm12 = vmand %vm3464_vm14, %vm3463_vm0  ;;  %vm3468_vm4 = vnez %v3382_v31  ;;  %vm3471_vm0 = vnez %v3392_v3  ;;  %vm3472_vm14 = vnez %v3400_v27 }
 0x180   :  { %852 = vrot.lane.b32.xlu2 %v832_v45, %s1283_s24  ;;  %v3466_v50 = vsel %vm2690_vm12, 4294967295, %v3465_v50  ;;  %vm3467_vm15 = vmor %vm3424_vm9, %vm3423_vm8  ;;  %v872_v0 = vperm.slane %v865_v24, 0 }
 0x181   :  { %v863_v32 = vsel %vm3467_vm15, 1, %v3330_v56  ;;  %vm3470_vm11 = vmor %vm3468_vm4, %vm3469_vm10  ;;  %vm3479_vm4 = vnez %v3416_v61  ;;  %vm3482_vm10 = vnez %v3422_v12 }
 0x182   :  { %v864_v6 = vsel %vm3470_vm11, 1, %v3330_v56  ;;  %vm816_vm3 = vmor %vm2636_vm6, %vm2644_vm2  ;;  %vm3475_vm2 = vnez %v3408_v44  ;;  %vm3476_vm6 = vnez %v3413_v48  ;;  %v870_v62 = vperm.slane %v863_v32, 0 }
 0x183   :  { %vm3473_vm12 = vmor %vm3471_vm0, %vm3472_vm14  ;;  %vm3484_vm0 = vnez %v3466_v50  ;;  %vm3485_vm14 = vnez %v3455_v60  ;;  %v871_v28 = vperm.slane %v864_v6, 0  ;;  %v954_v41 = vsel %vm816_vm3, 1, %v3330_v56 }
 0x184   :  { %v866_v54 = vsel %vm3473_vm12, 1, %v3330_v56  ;;  %vm3474_vm8 = vmor %vm3429_vm7, %vm2524_vm13  ;;  %vm3478_vm12 = vnez %v3411_v30  ;;  %vm3481_vm7 = vnez %v3419_v37  ;;  %vm3497_vm3 = vcmp.le.f32.partialorder %v1430_v8, 2.0 }
 0x185   :  { %v867_v53 = vsel %vm3474_vm8, 1, %v3330_v56  ;;  %vm818_vm9 = vmor %vm2658_vm1, %vm2674_vm5  ;;  %v873_v31 = vperm.slane %v866_v54, 0  ;;  %v961_v48 = vperm.slane %v954_v41, 0 }
 0x186   :  { %vm3477_vm15 = vmor %vm3475_vm2, %vm3476_vm6  ;;  %vm3486_vm2 = vnez %v3435_v10  ;;  %vm3487_vm6 = vnez %v3439_v25  ;;  %v874_v7 = vperm.slane %v867_v53, 0 }
 0x187   :  { %v862_v52 = vsel %vm3477_vm15, 1, %v3330_v56  ;;  %vm3480_vm13 = vmor %vm3478_vm12, %vm3479_vm4  ;;  %vm3489_vm12 = vcmp.le.f32.partialorder %v1354_v43, 2.0  ;;  %vm3490_vm4 = vnez %v3120_v35 }
 0x188   :  { %v868_v42 = vsel %vm3480_vm13, 1, %v3330_v56  ;;  %vm3483_vm11 = vmor %vm3481_vm7, %vm3482_vm10  ;;  %vm3493_vm7 = vcmp.ge.f32.partialorder %v1354_v43, 4.0  ;;  %vm3494_vm10 = vnez %v3125_v38  ;;  %v869_v27 = vperm.slane %v862_v52, 0 }
 0x189   :  { %v955_v34 = vsel %vm3483_vm11, 1, %v3330_v56  ;;  %vm819_vm8 = vmor %vm3485_vm14, %vm3484_vm0  ;;  %v875_v36 = vperm.slane %v868_v42, 0  ;;  %vm3498_vm0 = vnez %v3140_v49 }
 0x18a   :  { %vm3488_vm15 = vmor %vm3486_vm2, %vm3487_vm6  ;;  %v962_v44 = vperm.slane %v955_v34, 0  ;;  %v957_v35 = vsel %vm819_vm8, 1, %v3330_v56  ;;  %vm3501_vm2 = vcmp.ge.f32.partialorder %v1430_v8, 4.0  ;;  %vm3502_vm6 = vnez %v3150_v57 }
 0x18b   :  { %v953_v26 = vsel %vm3488_vm15, 1, %v3330_v56  ;;  %vm2759_vm13 = vmand %vm3490_vm4, %vm3489_vm12  ;;  %vm2788_vm12 = vcmp.eq.s32.totalorder %v872_v0, 1  ;;  %vm2792_vm8 = vcmp.eq.s32.totalorder %v870_v62, 1  ;;  %vm2796_vm4 = vcmp.eq.s32.totalorder %v871_v28, 1 }
 0x18c   :  { %vm2767_vm11 = vmand %vm3494_vm10, %vm3493_vm7  ;;  %v960_v43 = vperm.slane %v953_v26, 0  ;;  %vm854_vm10 = vcmp.lt.s32.totalorder %v1313_v2, 4  ;;  %v956_v57 = vsel %vm818_vm9, 1, %v3330_v56  ;;  %v964_v12 = vperm.slane %v957_v35, 0 }
 0x18d   :  { %vm2776_vm14 = vmand %vm3498_vm0, %vm3497_vm3  ;;  %vm2805_vm3 = vcmp.eq.s32.totalorder %v874_v7, 1  ;;  %vm2815_vm0 = vcmp.eq.s32.totalorder %v873_v31, 1  ;;  %vm2830_vm5 = vcmp.eq.s32.totalorder %v962_v44, 1  ;;  %vm944_vm9 = vcmp.lt.s32.totalorder %v1313_v2, 124 }
 0x18e   :  { %vm2784_vm15 = vmand %vm3502_vm6, %vm3501_vm2  ;;  %vm2839_vm2 = vcmp.eq.s32.totalorder %v960_v43, 1  ;;  %vm2843_vm6 = vcmp.eq.s32.totalorder %v961_v48, 1  ;;  %v963_v53 = vperm.slane %v956_v57, 0 }
 0x18f   :  { %vm814_vm7 = vmor %vm2759_vm13, %vm2767_vm11  ;;  %vm2822_vm13 = vcmp.eq.s32.totalorder %v869_v27, 1  ;;  %vm2826_vm11 = vcmp.eq.s32.totalorder %v875_v36, 1 }
 0x190   :  { %vm820_vm1 = vmor %vm2776_vm14, %vm2784_vm15  ;;  %v952_v50 = vsel %vm814_vm7, 1, %v3330_v56  ;;  %vm2864_vm14 = vcmp.eq.s32.totalorder %v964_v12, 1  ;;  %vm2906_vm15 = vcmp.eq.s32.totalorder %v963_v53, 1 }
 0x1ba   :  { %v2432_v29 = vpop.permute.xlu2 %840 }
 0x1c2   :  { %v2491_v33 = vpop.permute.xlu2 %846 }
 0x1ca   :  { %v2586_v16 = vpop.permute.xlu2 %932 }
 0x1d1   :  { %v2574_v55 = vpop.permute.xlu1 %844  ;;  %v2576_v47 = vpop.permute.xlu0 %842 }
 0x1d2   :  { %v2684_v46 = vpop.permute.xlu2 %938  ;;  %v858_v32 = vsel %vm854_vm10, %v2574_v55, %v2491_v33  ;;  %v859_v6 = vsel %vm854_vm10, %v2576_v47, %v2574_v55  ;;  %v860_v54 = vsel %vm854_vm10, %v2432_v29, %v2576_v47  ;;  %v958_v55 = vsel %vm820_vm1, 1, %v3330_v56 }
 0x1d3   :  { %v886_v41 = vsel %vm2788_vm12, %v858_v32, -inf  ;;  %v884_v40 = vsel %vm2792_vm8, %v860_v54, -inf  ;;  %v885_v31 = vsel %vm2796_vm4, %v859_v6, -inf  ;;  %v965_v30 = vperm.slane %v958_v55, 0 }
 0x1d4   :  { %v899_v43 = vrot.slane %v886_v41, 2  ;;  %vm3529_vm12 = vcmask 1041408  }
 0x1d5   :  { %vm3530_vm8 = vmmov %vm3529_vm12  ;;  %vm972_vm7 = vcmp.eq.s32.totalorder %v965_v30, 1 }
 0x1d9   :  { %v851_v59 = vpop.permute.xlu1 %850  ;;  %v2652_v9 = vpop.permute.xlu0 %848 }
 0x1da   :  { %v856_v25 = vsel %vm854_vm10, %v2652_v9, %v851_v59  ;;  %v853_v51 = vpop.permute.xlu2 %852  ;;  %v857_v7 = vsel %vm854_vm10, %v2491_v33, %v2652_v9  ;;  %v897_v33 = vrot.slane %v884_v40, 6  ;;  %v898_v9 = vrot.slane %v885_v31, 4 }
 0x1db   :  { %v888_v0 = vsel %vm2805_vm3, %v856_v25, -inf  ;;  %v855_v52 = vsel %vm854_vm10, %v851_v59, %v853_v51  ;;  %v861_v28 = vsel %vm854_vm10, %v853_v51, %v2432_v29  ;;  %v959_v59 = vperm.slane %v952_v50, 0 }
 0x1dc   :  { %v900_v63 = vrot.slane %v888_v0, 6  ;;  %v883_v36 = vsel %vm2822_vm13, %v861_v28, -inf  ;;  %v887_v38 = vsel %vm2815_vm0, %v857_v7, -inf  ;;  %vm3531_vm10 = vcmask 1045508  }
 0x1dd   :  { %v902_v8 = vsel %vm3530_vm8, %v883_v36, %v897_v33  ;;  %vm966_vm4 = vcmp.eq.s32.totalorder %v959_v59, 1  ;;  %v903_v1 = vsel %vm3531_vm10, %v898_v9, %v899_v43  ;;  %vm3532_vm3 = vcmask 1043456   ;;  %vm3534_vm13 = vmmov %vm3531_vm10 }
 0x1de   :  { %v905_v37 = vsel %vm3529_vm12, %v887_v38, %v900_v63  ;;  %v904_v24 = vsel %vm3532_vm3, %v902_v8, %v903_v1  ;;  %vm3533_vm0 = vmmov %vm3532_vm3 }
 0x1df   :  { %vm3537_vm1 = vmmov %vm3533_vm0 }
 0x1e1   :  { %v937_v58 = vpop.permute.xlu1 %936  ;;  %v935_v3 = vpop.permute.xlu0 %934 }
 0x1e2   :  { %v947_v47 = vsel %vm944_vm9, %v937_v58, %v2684_v46  ;;  %v948_v26 = vsel %vm944_vm9, %v935_v3, %v937_v58  ;;  %v889_v58 = vsel %vm2826_vm11, %v855_v52, -inf  ;;  %v949_v27 = vsel %vm944_vm9, %v2586_v16, %v935_v3  ;;  %vm3535_vm11 = vmmov %vm3530_vm8 }
 0x1e3   :  { %v976_v44 = vsel %vm2830_vm5, %v947_v47, -inf  ;;  %v975_v35 = vsel %vm2843_vm6, %v948_v26, -inf  ;;  %v901_v3 = vrot.slane %v889_v58, 4  ;;  %v974_v61 = vsel %vm2839_vm2, %v949_v27, -inf  ;;  %vm3536_vm5 = vmmov %vm3530_vm8 }
 0x1e4   :  { %v989_v57 = vrot.slane %v976_v44, 2  ;;  %v988_v12 = vrot.slane %v975_v35, 4  ;;  %v987_v51 = vrot.slane %v974_v61, 6  ;;  %vm3541_vm12 = vmmov %vm3536_vm5  ;;  %v1072_v35 = vld.sshfl [vmem:[#allocation1 + $0x30] sm:$0xff pattern:$0x75316420] }
 0x1e5   :  { %v906_v50 = vsel %vm3533_vm0, %v905_v37, %v901_v3  ;;  %vm3542_vm8 = vmmov %vm3536_vm5 }
 0x1e6   :  { %v993_v6 = vsel %vm3534_vm13, %v988_v12, %v989_v57  ;;  %v910_v55 = vmax.f32 %v2344_v39, %v906_v50 }
 0x1e9   :  { %v943_v42 = vpop.permute.xlu1 %942  ;;  %v941_v62 = vpop.permute.xlu0 %940 }
 0x1ea   :  { %v945_v29 = vsel %vm944_vm9, %v941_v62, %v943_v42  ;;  %v946_v25 = vsel %vm944_vm9, %v2684_v46, %v941_v62 }
 0x1eb   :  { %v978_v48 = vsel %vm2864_vm14, %v945_v29, -inf  ;;  %v977_v54 = vsel %vm2906_vm15, %v946_v25, -inf  ;;  %vm3539_vm14 = vmmov %vm3536_vm5 }
 0x1ec   :  { %v990_v10 = vrot.slane %v978_v48, 6  ;;  %vm3540_vm15 = vmmov %vm3536_vm5 }
 0x1ed   :  { %v219_v39 = vsel %vm3540_vm15, %v1438_v20, 0.0 }
 0x1ee   :  { %v995_v52 = vsel %vm3536_vm5, %v977_v54, %v990_v10 }
 0x1f1   :  { %v931_v45 = vpop.permute.xlu0 %930 }
 0x1f2   :  { %v950_v60 = vsel %vm944_vm9, %v931_v45, %v2586_v16  ;;  %v951_v23 = vsel %vm944_vm9, %v943_v42, %v931_v45  ;;  %v909_v42 = vmax.f32 %v2331_v11, %v904_v24  ;;  %vm3538_vm9 = vmmov %vm3533_vm0  ;;  %v218_v11 = vsel %vm3539_vm14, %v1436_v19, 0.0 }
 0x1f3   :  { %v973_v32 = vsel %vm966_vm4, %v950_v60, -inf  ;;  %v979_v46 = vsel %vm972_vm7, %v951_v23, -inf  ;;  %vm3543_vm4 = vmmov %vm3536_vm5  ;;  %vm3545_vm0 = vnez %v3084_v5 }
 0x1f4   :  { %v991_v53 = vrot.slane %v979_v46, 4  ;;  %v992_v0 = vsel %vm3535_vm11, %v973_v32, %v987_v51  ;;  %v225_v40 = vsel %vm3543_vm4, %v1441_v21, 0.0  ;;  %vm3544_vm7 = vmmov %vm3543_vm4  ;;  %v3548_v21 = vld [vmem:[#allocation14_spill] sm:$0xff] }
 0x1f5   :  { %v994_v16 = vsel %vm3537_vm1, %v992_v0, %v993_v6  ;;  %v227_v29 = vsel %vm3544_vm7, %v1443_v22, 0.0  ;;  %vm3547_vm5 = vmmov %vm3543_vm4  ;;  %vm3549_vm1 = vnez %v3548_v21  ;;  %v3550_v22 = vld [vmem:[#allocation15_spill] sm:$0xff] }
 0x1f6   :  { %v996_v34 = vsel %vm3538_vm9, %v995_v52, %v991_v53  ;;  %v999_v62 = vmax.f32 %v2418_v4, %v994_v16  ;;  %v221_v4 = vsel %vm3541_vm12, %v1432_v14, 0.0  ;;  %v3546_v14 = vld [vmem:[#allocation16_spill] sm:$0xff]  ;;  %vm3552_vm14 = vmmov %vm3543_vm4 }
 0x1f7   :  { %v1000_v28 = vmax.f32 %v2424_v13, %v996_v34  ;;  %v220_v13 = vadd.f32 %v219_v39, %v218_v11  ;;  %v1081_v30 = vsel %vm3552_vm14, %v1072_v35, 0  ;;  %vm3553_vm15 = vmmov %vm3543_vm4 }
 0x1f8   :  { %v1001_v47 = vmax.f32 %v909_v42, %v999_v62  ;;  %vm3554_vm12 = vmmov %vm3543_vm4 }
 0x1f9   :  { %v1002_v26 = vmax.f32 %v910_v55, %v1000_v28  ;;  %vm3556_vm7 = vmmov %vm3543_vm4 }
 0x1fa   :  { %vm1036_vm2 = vcmp.ge.f32.partialorder %v1334_v17, %v1001_v47  ;;  %v223_v17 = vsel %vm3542_vm8, %v1434_v15, 0.0  ;;  %v229_v15 = vsel %vm3547_vm5, %v3546_v14, 0.0  ;;  %vm3555_vm8 = vmmov %vm3543_vm4 }
 0x1fb   :  { %vm1037_vm6 = vcmp.ge.f32.partialorder %v1336_v18, %v1002_v26  ;;  %v1038_v59 = vsel %vm1036_vm2, 1, %v3330_v56  ;;  %v222_v18 = vadd.f32 %v221_v4, %v220_v13  ;;  %vm3551_vm2 = vnez %v3550_v22 }
 0x1fc   :  { %v1039_v41 = vsel %vm1037_vm6, 1, %v3330_v56  ;;  %1040 = vst [vmem:[#allocation1] ss:$2 sm:$0xff] %v1038_v59 }
 0x1fd   :  { %1042 = vst [vmem:[#allocation1 + $0x10] ss:$2 sm:$0xff] %v1039_v41  ;;  %v224_v31 = vadd.f32 %v223_v17, %v222_v18 }
 0x1ff   :  { %v226_v20 = vadd.f32 %v225_v40, %v224_v31 }
 0x201   :  { %v228_v27 = vadd.f32 %v227_v29, %v226_v20 }
 0x203   :  { %v1043_v7 = vld.sshfl [vmem:[#allocation1] sm:$0xff pattern:$0x75643120]  ;;  %v1044_v19 = vld.sshfl [vmem:[#allocation1 + $0x8] sm:$0xff pattern:$0x75643120]  ;;  %v230_v5 = vadd.f32 %v229_v15, %v228_v27 }
 0x204   :  { %vm1047_vm10 = vcmp.ne.s32.totalorder %v1043_v7, 0  ;;  %v1045_v63 = vld.sshfl [vmem:[#allocation1 + $0x10] sm:$0xff pattern:$0x75643120]  ;;  %vm1048_vm3 = vcmp.ne.s32.totalorder %v1044_v19, 0 }
 0x205   :  { %vm1051_vm13 = vmand %vm3545_vm0, %vm1047_vm10  ;;  %vm1049_vm11 = vcmp.ne.s32.totalorder %v1045_v63, 0  ;;  %231 = vadd.xlane.f32.xlu0 %v230_v5 }
 0x206   :  { %v1055_v58 = vsel %vm1051_vm13, 1, %v3330_v56  ;;  %vm1052_vm9 = vmand %vm3549_vm1, %vm1048_vm3  ;;  %vm1105_vm3 = vcmp.eq.s32.totalorder %v1313_v2, 0 }
 0x207   :  { %vm1053_vm6 = vmand %vm3551_vm2, %vm1049_vm11  ;;  %v1056_v36 = vsel %vm1052_vm9, 1, %v3330_v56  ;;  %1059 = vst [vmem:[#allocation1] ss:$2 sm:$0xff] %v1055_v58 }
 0x208   :  { %v1057_v44 = vsel %vm1053_vm6, 1, %v3330_v56  ;;  %1061 = vst [vmem:[#allocation1 + $0x10] ss:$2 sm:$0xff] %v1056_v36  ;;  %vm3557_vm10 = vmmov %vm3543_vm4 }
 0x209   :  { %1063 = vst [vmem:[#allocation1 + $0x20] ss:$2 sm:$0xff] %v1057_v44 }
 0x20e   :  { %v1066_v43 = vld.sshfl [vmem:[#allocation1] sm:$0xff pattern:$0x75316420]  ;;  %v1067_v33 = vld.sshfl [vmem:[#allocation1 + $0x8] sm:$0xff pattern:$0x75316420] }
 0x20f   :  { %v1068_v9 = vld.sshfl [vmem:[#allocation1 + $0x10] sm:$0xff pattern:$0x75316420]  ;;  %v1069_v48 = vld.sshfl [vmem:[#allocation1 + $0x18] sm:$0xff pattern:$0x75316420] }
 0x210   :  { %v1070_v38 = vld.sshfl [vmem:[#allocation1 + $0x20] sm:$0xff pattern:$0x75316420]  ;;  %v1071_v3 = vld.sshfl [vmem:[#allocation1 + $0x28] sm:$0xff pattern:$0x75316420] }
 0x211   :  { %v1073_v61 = vsel %vm3553_vm15, %v1066_v43, 0  ;;  %v1074_v49 = vsel %vm3554_vm12, %v1067_v33, 0  ;;  %v1075_v37 = vsel %vm3555_vm8, %v1068_v9, 0  ;;  %v1077_v56 = vsel %vm3543_vm4, %v1070_v38, 0 }
 0x212   :  { %v1079_v8 = vsel %vm3556_vm7, %v1071_v3, 0  ;;  %v1082_v57 = vadd.s32 %v1081_v30, %v1075_v37  ;;  %v1076_v12 = vsel %vm3557_vm10, %v1069_v48, 0  ;;  %v1078_v25 = vadd.s32 %v1077_v56, %v1073_v61 }
 0x213   :  { %v1080_v10 = vadd.s32 %v1079_v8, %v1074_v49 }
 0x214   :  { %v1084_v45 = vadd.s32 %v1082_v57, %v1076_v12 }
 0x215   :  { %v1083_v1 = vadd.s32 %v1080_v10, %v1078_v25 }
 0x217   :  { %v1085_v51 = vadd.s32 %v1084_v45, %v1083_v1 }
 0x219   :  { %v1087_v60 = vshrl.u32 %v1085_v51, 16  ;;  %v1086_v23 = vand.u32 65535, %v1085_v51 }
 0x21b   :  { %v1089_v24 = vcvt.s32.f32 %v1087_v60  ;;  %v1088_v50 = vcvt.s32.f32 %v1086_v23 }
 0x21d   :  { %1092 = vadd.xlane.f32.xlu1 %v1089_v24  ;;  %1090 = vadd.xlane.f32.xlu2 %v1088_v50 }
 0x278   :  { %v232_v32 = vpop.xlane.xlu0 %231 }
 0x279   :  { %v233_v46 = vrot.slane %v232_v32, 4 }
 0x27b   :  { %v234_v6 = vadd.f32 %v233_v46, %v232_v32 }
 0x27d   :  { %v235_v54 = vrot.slane %v234_v6, 2 }
 0x27f   :  { %v236_v53 = vadd.f32 %v235_v54, %v234_v6 }
 0x281   :  { %v237_v0 = vrot.slane %v236_v53, 1 }
 0x283   :  { %v238_v52 = vadd.f32 %v237_v0, %v236_v53 }
 0x285   :  { %1153 = vpush %v238_v52 }
 0x290   :  { %v1093_v16 = vpop.xlane.xlu1 %1092  ;;  %v1091_v42 = vpop.xlane.xlu2 %1090 }
 0x291   :  { %v1095_v34 = vcvt.f32.s32 %v1093_v16  ;;  %v1094_v55 = vcvt.f32.s32 %v1091_v42 }
 0x293   :  { %v1096_v62 = vshll.u32 %v1095_v34, 16 }
 0x295   :  { %v1097_v28 = vadd.s32 %v1096_v62, %v1094_v55 }
 0x297   :  { %v1098_v47 = vrot.slane %v1097_v28, 4 }
 0x299   :  { %v1099_v26 = vadd.s32 %v1098_v47, %v1097_v28 }
 0x29b   :  { %v1100_v59 = vrot.slane %v1099_v26, 2 }
 0x29d   :  { %v1101_v41 = vadd.s32 %v1100_v59, %v1099_v26 }
 0x29f   :  { %v1102_v11 = vrot.slane %v1101_v41, 1 }
 0x2a1   :  { %v1103_v39 = vadd.s32 %v1102_v11, %v1101_v41 }
 0x2a3   :  { %1155 = vpush %v1103_v39 }
 0x2b6   :  { %s1154_s4 = spop %1153 }
 0x2b7   :  { %v1106_v4 = vstv %s1154_s4 }
 0x2b8   :  { %v1107_v13 = vsel %vm1105_vm3, %v1106_v4, 0.0 }
 0x2b9   :  { %1108 = vst [vmem:[#allocation7] sm:$0x1] %v1107_v13 }
 0x2ba   :  { %1122 = dma.vmem_to_hbm [thread:$0]  %s1118_s27, 16, %s1120_s30, [#allocation4]  }
 0x2d4   :  { %s1156_s10 = spop %1155 }
 0x2d5   :  { %v1109_v17 = vstv %s1156_s10 }
 0x2d6   :  { %v1110_v18 = vsel %vm1105_vm3, %v1109_v17, 0 }
 0x2d7   :  { %1111 = vst [vmem:[#allocation8] sm:$0x1] %v1110_v18 }
 0x2d8   :  { %1133 = dma.vmem_to_hbm [thread:$0]  %s1129_s6, 16, %s1131_s9, [#allocation9]  }
 0x2d9   :  { %1270 = dma.done.wait [#allocation4], 16  }
 0x2da   :  { %1271 = vsyncadd [#allocation4], 4294967280 }
 0x2db   :  { %1272 = dma.done.wait [#allocation9], 16  }
 0x2dc   :  { %1273 = vsyncadd [#allocation9], 4294967280 }
 0x2dd   :  { %1142 = vsyncpa [#allocation3], 1 }
 0x2de   :  { %1143 = vsyncpa [#allocation6], 1 }
 0x2df   :  { %1144 = vsyncpa [#allocation4], 1 }
 0x2e0   :  { %1145 = vsyncpa [#allocation9], 1 }

</bundles_post_ra>
